<compile_context>
chip_gen: v6e
topology: v6e:2x2x1
jax: 0.10.0
libtpu: 0.0.40
codegen_flags: <defaults>
</compile_context>

<pallas_src>
import functools

import jax
import jax.numpy as jnp
from jax.experimental import pallas as pl
from jax.experimental.pallas import tpu as pltpu


# ---------------------------------------------------------------------------
# Chip / VMEM helpers
# ---------------------------------------------------------------------------
def _bf16_exp_supported():
    """bf16 EUP exists on v6e / v7x; keep f32 transcendentals elsewhere."""
    try:
        kind = jax.devices()[0].device_kind.lower()
    except Exception:
        return False
    return ("v6" in kind) or ("v7" in kind)


def _vmem_limit_bytes():
    try:
        cap = int(pltpu.get_tpu_info().vmem_capacity_bytes)
    except Exception:
        cap = 64 * 1024 * 1024
    # Leave ~1/8th (>= 8 MiB) for compiler-internal scratch:
    #   v7x     (64 MiB physical)  -> ~56 MiB scoped limit
    #   v5e/v6e (128 MiB physical) -> ~112 MiB scoped limit
    return cap - max(cap // 8, 8 * 1024 * 1024)


def _choose_tile_i(n, tile_budget_bytes):
    """Largest multiple of 128 that divides N and keeps the (TI, N) score /
    exp intermediates (~12 B live per element) within the given budget."""
    if n % 128 != 0:
        return n                               # tiny / irregular spatial sizes
    cap = max(128, tile_budget_bytes // (12 * n))
    cap = max(128, min(n, (cap // 128) * 128))
    ti = 128
    t = 256
    while t <= cap:
        if n % t == 0:
            ti = t
        t += 128
    return ti


def _plan_tiles(c, n, cq, vmem_limit):
    """Pick (tile_i, slab_buffers) accounting for all resident VMEM users."""
    def resident(bufs):
        slabs = 2 * bufs * c * n * 4                 # (C,N) f32 in + out slabs
        scratch = cq * n * 2 + cq * n * 4            # gx bf16 + acc f32
        weights = 2 * 2 * (3 * cq * c + c * cq)      # bf16, double-buffered
        return slabs + scratch + weights

    margin = 2 << 20
    per_row = 12 * n                                  # live bytes per query row
    slab_buffers = 2
    budget = vmem_limit - resident(2) - margin
    if budget < per_row * 128:
        # Double-buffered slabs don't leave room for even a 128-row tile:
        # single-buffer the big slabs (their index only changes per batch).
        slab_buffers = 1
        budget = vmem_limit - resident(1) - margin
    tile_i = _choose_tile_i(n, max(budget, per_row * 128))
    return tile_i, slab_buffers


def _choose_gx_chunk(n):
    """Column chunk for the i==0 g(x) projection (avoid a full (C,N) bf16
    temporary at large N)."""
    if n % 128 != 0 or n <= 1024:
        return n
    for c in (1024, 512, 256, 128):
        if n % c == 0:
            return c
    return n


# ---------------------------------------------------------------------------
# Pallas kernels
# ---------------------------------------------------------------------------
def _softmax_num_and_scaled_hx(s, hx_t, use_bf16_exp):
    """Shared softmax helper.

    s    : (R, N) f32 scores
    hx_t : (R-indexed columns) (Cq, R) f32 h(x) tile
    Returns (e_bf16 (R, N), hx_scaled_bf16 (Cq, R)) such that
      attn_hx = hx_scaled @ e  reproduces  hx @ softmax(s).
    The 1/row_sum is folded into the small (Cq, R) operand instead of the
    big (R, N) tile.
    """
    s = s - jnp.max(s, axis=-1, keepdims=True)
    if use_bf16_exp:
        e = jnp.exp(s.astype(jnp.bfloat16))                       # (R, N) bf16
    else:
        e = jnp.exp(s)                                            # (R, N) f32
    row_sum = jnp.sum(e, axis=-1, keepdims=True, dtype=jnp.float32)   # (R, 1)
    inv_row = jnp.transpose(pl.reciprocal(row_sum, approx=True))      # (1, R)
    hx_scaled = (hx_t * inv_row).astype(jnp.bfloat16)                 # (Cq, R)
    return e.astype(jnp.bfloat16), hx_scaled


def _self_attention_tiled_kernel(x_ref, wf_ref, wg_ref, wh_ref, wv_ref,
                                 gamma_ref, o_ref, gx_ref, acc_ref,
                                 *, tile_i, gx_chunk, use_bf16_exp):
    # x_ref   : (C, N)   f32  one batch element
    # wf/wg/wh: (Cq, C)  bf16 ; wv: (C, Cq) bf16 ; gamma: (1,1) f32 SMEM
    # o_ref   : (C, N)   f32  (revisited across i, written at last i)
    # gx_ref  : (Cq, N)  bf16 scratch ; acc_ref: (Cq, N) f32 scratch
    i = pl.program_id(1)
    n_i = pl.num_programs(1)
    n = gx_ref.shape[1]

    @pl.when(i == 0)
    def _init():
        acc_ref[...] = jnp.zeros_like(acc_ref)
        n_chunks = n // gx_chunk
        if n_chunks == 1:
            x_b = x_ref[...].astype(jnp.bfloat16)                     # (C, N)
            gx_ref[...] = jnp.dot(wg_ref[...], x_b,
                                  preferred_element_type=jnp.float32
                                  ).astype(jnp.bfloat16)
        else:
            def body(c, carry):
                cs = pl.multiple_of(c * gx_chunk, gx_chunk)
                xc = x_ref[:, pl.ds(cs, gx_chunk)].astype(jnp.bfloat16)
                gx_ref[:, pl.ds(cs, gx_chunk)] = jnp.dot(
                    wg_ref[...], xc,
                    preferred_element_type=jnp.float32).astype(jnp.bfloat16)
                return carry
            jax.lax.fori_loop(0, n_chunks, body, 0, unroll=(n_chunks <= 4))

    # Current tile of query rows (spatial positions i*TI .. i*TI+TI-1).
    align = 128 if tile_i % 128 == 0 else tile_i
    start = pl.multiple_of(i * tile_i, align)
    x_tile = x_ref[:, pl.ds(start, tile_i)].astype(jnp.bfloat16)      # (C, TI)

    # Separate f / h 1x1 convolutions (no sublane-unaligned fused slice).
    fx_t = jnp.dot(wf_ref[...], x_tile,
                   preferred_element_type=jnp.float32
                   ).astype(jnp.bfloat16)                             # (Cq, TI)
    hx_t = jnp.dot(wh_ref[...], x_tile,
                   preferred_element_type=jnp.float32)                # (Cq, TI)

    # scores[p, j] = sum_c fx[c, p] * gx[c, j] (contraction over axis 0 of
    # both operands -> no explicit transpose).
    s = jax.lax.dot_general(fx_t, gx_ref[...],
                            dimension_numbers=(((0,), (0,)), ((), ())),
                            preferred_element_type=jnp.float32)       # (TI, N)

    e_bf, hx_scaled = _softmax_num_and_scaled_hx(s, hx_t, use_bf16_exp)

    # attention_hx[c, j] += sum_{p in tile} (hx[c, p]/row_sum[p]) * e[p, j]
    acc_ref[...] += jnp.dot(hx_scaled, e_bf,
                            preferred_element_type=jnp.float32)       # (Cq, N)

    @pl.when(i == n_i - 1)
    def _finalize():
        out = jnp.dot(wv_ref[...], acc_ref[...].astype(jnp.bfloat16),
                      preferred_element_type=jnp.float32)             # (C, N)
        o_ref[...] = gamma_ref[0, 0] * out + x_ref[...]


def _self_attention_single_tile_kernel(x_ref, wf_ref, wg_ref, wh_ref, wv_ref,
                                       gamma_ref, o_ref, *, use_bf16_exp):
    """Fast path when TI == N: no accumulator scratch, no pl.when branches."""
    x_b = x_ref[...].astype(jnp.bfloat16)                             # (C, N)
    fx = jnp.dot(wf_ref[...], x_b,
                 preferred_element_type=jnp.float32).astype(jnp.bfloat16)
    gx = jnp.dot(wg_ref[...], x_b,
                 preferred_element_type=jnp.float32).astype(jnp.bfloat16)
    hx = jnp.dot(wh_ref[...], x_b,
                 preferred_element_type=jnp.float32)                  # (Cq, N)

    s = jax.lax.dot_general(fx, gx,
                            dimension_numbers=(((0,), (0,)), ((), ())),
                            preferred_element_type=jnp.float32)       # (N, N)

    e_bf, hx_scaled = _softmax_num_and_scaled_hx(s, hx, use_bf16_exp)

    att_hx = jnp.dot(hx_scaled, e_bf,
                     preferred_element_type=jnp.float32)              # (Cq, N)
    out = jnp.dot(wv_ref[...], att_hx.astype(jnp.bfloat16),
                  preferred_element_type=jnp.float32)                 # (C, N)
    o_ref[...] = gamma_ref[0, 0] * out + x_ref[...]


# ---------------------------------------------------------------------------
# Wrapper (layout + parameter prep; no activation transposes)
# ---------------------------------------------------------------------------
def self_attention_pallas(x_nchw, wf, wg, wh, wv, gamma, *, tile_i=None):
    """x_nchw: (B, C, W, H) float32.  Weights already spectral-normalized:
    wf/wg/wh: (Cq, C), wv: (C, Cq), gamma: (1,)."""
    B, C, W, H = x_nchw.shape
    N = W * H
    Cq = wf.shape[0]

    vmem_limit = _vmem_limit_bytes()
    tile_i_auto, slab_buffers = _plan_tiles(C, N, Cq, vmem_limit)
    if tile_i is None:
        tile_i = tile_i_auto
    assert N % tile_i == 0, (N, tile_i)
    n_i = N // tile_i

    # NCHW -> (B, C, N): a pure reshape, no HBM round-trip transpose.
    x_flat = x_nchw.reshape(B, C, N)

    # Cast MXU operands to bf16 once in the wrapper.
    wf_b = wf.astype(jnp.bfloat16)
    wg_b = wg.astype(jnp.bfloat16)
    wh_b = wh.astype(jnp.bfloat16)
    wv_b = wv.astype(jnp.bfloat16)
    gamma2 = jnp.reshape(gamma, (1, 1)).astype(jnp.float32)

    use_bf16_exp = _bf16_exp_supported()

    # Only touch pipeline_mode when VMEM pressure forces single-buffering
    # of the big (C, N) slabs (their block index only changes per batch).
    slab_kwargs = {}
    if slab_buffers == 1:
        slab_kwargs = dict(pipeline_mode=pl.Buffered(1))

    weight_specs_1 = [
        pl.BlockSpec((Cq, C), lambda b: (0, 0)),
        pl.BlockSpec((Cq, C), lambda b: (0, 0)),
        pl.BlockSpec((Cq, C), lambda b: (0, 0)),
        pl.BlockSpec((C, Cq), lambda b: (0, 0)),
        pl.BlockSpec((1, 1), lambda b: (0, 0),
                     memory_space=pltpu.MemorySpace.SMEM),
    ]
    weight_specs_2 = [
        pl.BlockSpec((Cq, C), lambda b, i: (0, 0)),
        pl.BlockSpec((Cq, C), lambda b, i: (0, 0)),
        pl.BlockSpec((Cq, C), lambda b, i: (0, 0)),
        pl.BlockSpec((C, Cq), lambda b, i: (0, 0)),
        pl.BlockSpec((1, 1), lambda b, i: (0, 0),
                     memory_space=pltpu.MemorySpace.SMEM),
    ]

    if n_i == 1:
        kernel = functools.partial(_self_attention_single_tile_kernel,
                                   use_bf16_exp=use_bf16_exp)
        out_flat = pl.pallas_call(
            kernel,
            out_shape=jax.ShapeDtypeStruct((B, C, N), jnp.float32),
            grid_spec=pltpu.PrefetchScalarGridSpec(
                num_scalar_prefetch=0,
                grid=(B,),
                in_specs=[pl.BlockSpec((pl.Squeezed(), C, N),
                                       lambda b: (b, 0, 0), **slab_kwargs)]
                         + weight_specs_1,
                out_specs=pl.BlockSpec((pl.Squeezed(), C, N),
                                       lambda b: (b, 0, 0), **slab_kwargs),
            ),
            compiler_params=pltpu.CompilerParams(
                dimension_semantics=("parallel",),
                vmem_limit_bytes=int(vmem_limit),
            ),
        )(x_flat, wf_b, wg_b, wh_b, wv_b, gamma2)
    else:
        gx_chunk = _choose_gx_chunk(N)
        kernel = functools.partial(_self_attention_tiled_kernel,
                                   tile_i=tile_i, gx_chunk=gx_chunk,
                                   use_bf16_exp=use_bf16_exp)
        out_flat = pl.pallas_call(
            kernel,
            out_shape=jax.ShapeDtypeStruct((B, C, N), jnp.float32),
            grid_spec=pltpu.PrefetchScalarGridSpec(
                num_scalar_prefetch=0,
                grid=(B, n_i),
                in_specs=[pl.BlockSpec((pl.Squeezed(), C, N),
                                       lambda b, i: (b, 0, 0), **slab_kwargs)]
                         + weight_specs_2,
                out_specs=pl.BlockSpec((pl.Squeezed(), C, N),
                                       lambda b, i: (b, 0, 0), **slab_kwargs),
                scratch_shapes=[
                    pltpu.VMEM((Cq, N), jnp.bfloat16),   # g(x)
                    pltpu.VMEM((Cq, N), jnp.float32),    # attention_hx acc
                ],
            ),
            compiler_params=pltpu.CompilerParams(
                dimension_semantics=("parallel", "arbitrary"),
                vmem_limit_bytes=int(vmem_limit),
            ),
        )(x_flat, wf_b, wg_b, wh_b, wv_b, gamma2)

    return out_flat.reshape(B, C, W, H)


def spectral_normalize(w):
    """PyTorch spectral_norm divides the (out, in) weight matrix by its
    largest singular value (computed exactly here instead of via the module's
    running power-iteration buffers)."""
    sigma = jnp.linalg.svd(w, compute_uv=False)[0]
    return w / sigma


# ---------------------------------------------------------------------------
# Pure-JAX f32 reference (mirrors the PyTorch forward)
# ---------------------------------------------------------------------------
def self_attention_ref(x_nchw, wf, wg, wh, wv, gamma):
    B, C, W, H = x_nchw.shape
    N = W * H
    x = x_nchw.reshape(B, C, N)                        # (B, C, N)
    fx = jnp.einsum('oc,bcn->bon', wf, x)              # (B, Cq, N)
    gx = jnp.einsum('oc,bcn->bon', wg, x)
    hx = jnp.einsum('oc,bcn->bon', wh, x)
    fxgx = jnp.einsum('bci,bcj->bij', fx, gx)          # (B, N, N)
    attn = jax.nn.softmax(fxgx, axis=-1)
    att_hx = jnp.einsum('bci,bij->bcj', hx, attn)      # (B, Cq, N)
    out = jnp.einsum('oc,bcn->bon', wv, att_hx)        # (B, C, N)
    return (gamma * out + x).reshape(B, C, W, H)


# ---------------------------------------------------------------------------
if __name__ == "__main__":
    # in_dim=32, k=8 -> inner dim Cq=4; 16x16 spatial -> N=256 (lane-dense).
    B, C, W, H = 2, 32, 16, 16
    K = 8
    Cq = C // K

    key = jax.random.PRNGKey(0)
    kx, kf, kg, kh, kv = jax.random.split(key, 5)

    x = jax.random.normal(kx, (B, C, W, H), dtype=jnp.float32)

    # Conv2d(in, out, 1, bias=False) weights flattened to (out, in), then
    # spectral-normalized (as nn.utils.spectral_norm does at forward time).
    wf = spectral_normalize(jax.random.normal(kf, (Cq, C), jnp.float32) * 0.1)
    wg = spectral_normalize(jax.random.normal(kg, (Cq, C), jnp.float32) * 0.1)
    wh = spectral_normalize(jax.random.normal(kh, (Cq, C), jnp.float32) * 0.1)
    wv = spectral_normalize(jax.random.normal(kv, (C, Cq), jnp.float32) * 0.1)

    # gamma initialized to zero in the module: result == x exactly.  The auto
    # tile chooser picks TI == N here -> single-tile fast path.
    gamma0 = jnp.zeros((1,), jnp.float32)
    out0 = jax.block_until_ready(
        self_attention_pallas(x, wf, wg, wh, wv, gamma0))
    ref0 = self_attention_ref(x, wf, wg, wh, wv, gamma0)
    assert jnp.allclose(out0, ref0, atol=1e-5, rtol=1e-5)

    # Nonzero gamma exercises the full attention path (single-tile fast path).
    # Matmul operands (and exp on v6e/v7x) run in bf16 with f32 accumulation,
    # so compare against the f32 reference with a bf16-appropriate tolerance.
    gamma1 = jnp.full((1,), 0.5, jnp.float32)
    out1 = jax.block_until_ready(
        self_attention_pallas(x, wf, wg, wh, wv, gamma1))
    ref1 = self_attention_ref(x, wf, wg, wh, wv, gamma1)
    assert jnp.allclose(out1, ref1, atol=5e-2, rtol=5e-2), \
        float(jnp.max(jnp.abs(out1 - ref1)))

    # Coverage of the tiled (n_i > 1) kernel path with an explicit tile size
    # (at real SAGAN shapes the planner would pick this path automatically).
    out2 = jax.block_until_ready(
        self_attention_pallas(x, wf, wg, wh, wv, gamma1, tile_i=128))
    assert jnp.allclose(out2, ref1, atol=5e-2, rtol=5e-2), \
        float(jnp.max(jnp.abs(out2 - ref1)))

    print("KERNEL_OK")
</pallas_src>

<mosaic_0001>
module attributes {stable_mosaic.version = 11 : i64} {
  func.func @_self_attention_single_tile_kernel(%arg0: i32, %arg1: memref<1x32x256xf32, #tpu.memory_space<vmem>>, %arg2: memref<4x32xbf16, #tpu.memory_space<vmem>>, %arg3: memref<4x32xbf16, #tpu.memory_space<vmem>>, %arg4: memref<4x32xbf16, #tpu.memory_space<vmem>>, %arg5: memref<32x4xbf16, #tpu.memory_space<vmem>>, %arg6: memref<1x1xf32, #tpu.memory_space<smem>>, %arg7: memref<1x32x256xf32, #tpu.memory_space<vmem>>) attributes {dimension_semantics = [#tpu.dimension_semantics<parallel>], iteration_bounds = array<i64: 2>, scalar_prefetch = 0 : i64, scratch_operands = 0 : i64, tpu.core_type = #tpu.core_type<tc>, window_params = [{transform_indices = @transform_0, window_bounds = array<i64: 1, 32, 256>}, {pipeline_mode = #tpu.pipeline_mode<synchronous>, transform_indices = @transform_1, window_bounds = array<i64: 4, 32>}, {pipeline_mode = #tpu.pipeline_mode<synchronous>, transform_indices = @transform_2, window_bounds = array<i64: 4, 32>}, {pipeline_mode = #tpu.pipeline_mode<synchronous>, transform_indices = @transform_3, window_bounds = array<i64: 4, 32>}, {pipeline_mode = #tpu.pipeline_mode<synchronous>, transform_indices = @transform_4, window_bounds = array<i64: 32, 4>}, {transform_indices = @transform_5, window_bounds = array<i64: 1, 1>}, {transform_indices = @transform_6, window_bounds = array<i64: 1, 32, 256>}]} {
    %c0 = arith.constant 0 : index
    %c0_0 = arith.constant 0 : index
    %c0_1 = arith.constant 0 : index
    %0 = vector.load %arg1[%c0, %c0_0, %c0_1] : memref<1x32x256xf32, #tpu.memory_space<vmem>>, vector<1x32x256xf32>
    %1 = vector.shape_cast %0 : vector<1x32x256xf32> to vector<32x256xf32>
    %2 = arith.truncf %1 : vector<32x256xf32> to vector<32x256xbf16>
    %c0_2 = arith.constant 0 : index
    %c0_3 = arith.constant 0 : index
    %3 = vector.load %arg2[%c0_2, %c0_3] : memref<4x32xbf16, #tpu.memory_space<vmem>>, vector<4x32xbf16>
    %cst = arith.constant dense<0.000000e+00> : vector<4x256xf32>
    %4 = tpu.matmul %3, %2, %cst {dimension_numbers = #tpu.dot_dimension_numbers<[1], [0], [0], [1], [0, 0, 1, 1], [], []>} : vector<4x32xbf16>, vector<32x256xbf16>, vector<4x256xf32> -> vector<4x256xf32>
    %5 = arith.truncf %4 : vector<4x256xf32> to vector<4x256xbf16>
    %c0_4 = arith.constant 0 : index
    %c0_5 = arith.constant 0 : index
    %6 = vector.load %arg3[%c0_4, %c0_5] : memref<4x32xbf16, #tpu.memory_space<vmem>>, vector<4x32xbf16>
    %cst_6 = arith.constant dense<0.000000e+00> : vector<4x256xf32>
    %7 = tpu.matmul %6, %2, %cst_6 {dimension_numbers = #tpu.dot_dimension_numbers<[1], [0], [0], [1], [0, 0, 1, 1], [], []>} : vector<4x32xbf16>, vector<32x256xbf16>, vector<4x256xf32> -> vector<4x256xf32>
    %8 = arith.truncf %7 : vector<4x256xf32> to vector<4x256xbf16>
    %c0_7 = arith.constant 0 : index
    %c0_8 = arith.constant 0 : index
    %9 = vector.load %arg4[%c0_7, %c0_8] : memref<4x32xbf16, #tpu.memory_space<vmem>>, vector<4x32xbf16>
    %cst_9 = arith.constant dense<0.000000e+00> : vector<4x256xf32>
    %10 = tpu.matmul %9, %2, %cst_9 {dimension_numbers = #tpu.dot_dimension_numbers<[1], [0], [0], [1], [0, 0, 1, 1], [], []>} : vector<4x32xbf16>, vector<32x256xbf16>, vector<4x256xf32> -> vector<4x256xf32>
    %cst_10 = arith.constant dense<0.000000e+00> : vector<256x256xf32>
    %11 = tpu.matmul %5, %8, %cst_10 {dimension_numbers = #tpu.dot_dimension_numbers<[0], [0], [1], [1], [0, 1, 1, 1], [], []>} : vector<4x256xbf16>, vector<4x256xbf16>, vector<256x256xf32> -> vector<256x256xf32>
    %cst_11 = arith.constant dense<0xFF800000> : vector<256xf32>
    %12 = vector.multi_reduction <maximumf>, %11, %cst_11 [1] : vector<256x256xf32> to vector<256xf32>
    %13 = vector.shape_cast %12 : vector<256xf32> to vector<256x1xf32>
    %14 = vector.broadcast %13 : vector<256x1xf32> to vector<256x256xf32>
    %15 = arith.subf %11, %14 : vector<256x256xf32>
    %16 = math.exp %15 : vector<256x256xf32>
    %cst_12 = arith.constant dense<0.000000e+00> : vector<256xf32>
    %17 = vector.multi_reduction <add>, %16, %cst_12 [1] : vector<256x256xf32> to vector<256xf32>
    %18 = vector.shape_cast %17 : vector<256xf32> to vector<256x1xf32>
    %19 = tpu.reciprocal %18 {approx = true} : vector<256x1xf32> -> vector<256x1xf32>
    %20 = tpu.transpose %19, [1, 0] : vector<256x1xf32> -> vector<1x256xf32>
    %21 = vector.broadcast %20 : vector<1x256xf32> to vector<4x256xf32>
    %22 = arith.mulf %10, %21 : vector<4x256xf32>
    %23 = arith.truncf %22 : vector<4x256xf32> to vector<4x256xbf16>
    %24 = arith.truncf %16 : vector<256x256xf32> to vector<256x256xbf16>
    %cst_13 = arith.constant dense<0.000000e+00> : vector<4x256xf32>
    %25 = tpu.matmul %23, %24, %cst_13 {dimension_numbers = #tpu.dot_dimension_numbers<[1], [0], [0], [1], [0, 0, 1, 1], [], []>} : vector<4x256xbf16>, vector<256x256xbf16>, vector<4x256xf32> -> vector<4x256xf32>
    %c0_14 = arith.constant 0 : index
    %c0_15 = arith.constant 0 : index
    %26 = vector.load %arg5[%c0_14, %c0_15] : memref<32x4xbf16, #tpu.memory_space<vmem>>, vector<32x4xbf16>
    %27 = arith.truncf %25 : vector<4x256xf32> to vector<4x256xbf16>
    %cst_16 = arith.constant dense<0.000000e+00> : vector<32x256xf32>
    %28 = tpu.matmul %26, %27, %cst_16 {dimension_numbers = #tpu.dot_dimension_numbers<[1], [0], [0], [1], [0, 0, 1, 1], [], []>} : vector<32x4xbf16>, vector<4x256xbf16>, vector<32x256xf32> -> vector<32x256xf32>
    %c0_17 = arith.constant 0 : index
    %c0_18 = arith.constant 0 : index
    %29 = memref.load %arg6[%c0_17, %c0_18] : memref<1x1xf32, #tpu.memory_space<smem>>
    %30 = vector.broadcast %29 : f32 to vector<32x256xf32>
    %31 = arith.mulf %30, %28 : vector<32x256xf32>
    %c0_19 = arith.constant 0 : index
    %c0_20 = arith.constant 0 : index
    %c0_21 = arith.constant 0 : index
    %32 = vector.load %arg1[%c0_19, %c0_20, %c0_21] : memref<1x32x256xf32, #tpu.memory_space<vmem>>, vector<1x32x256xf32>
    %33 = vector.shape_cast %32 : vector<1x32x256xf32> to vector<32x256xf32>
    %34 = arith.addf %31, %33 : vector<32x256xf32>
    %c0_22 = arith.constant 0 : index
    %c0_23 = arith.constant 0 : index
    %c0_24 = arith.constant 0 : index
    %35 = vector.load %arg7[%c0_22, %c0_23, %c0_24] : memref<1x32x256xf32, #tpu.memory_space<vmem>>, vector<1x32x256xf32>
    %36 = vector.shape_cast %35 : vector<1x32x256xf32> to vector<32x256xf32>
    %37 = vector.shape_cast %34 : vector<32x256xf32> to vector<1x32x256xf32>
    tpu.vector_store %arg7[%c0_22, %c0_23, %c0_24], %37 {strides = array<i32>} : memref<1x32x256xf32, #tpu.memory_space<vmem>>, vector<1x32x256xf32>,
    return
  }
  func.func @transform_0(%arg0: i32) -> (i32, i32, i32) {
    %c0_i32 = arith.constant 0 : i32
    %c0_i32_0 = arith.constant 0 : i32
    %c0_i32_1 = arith.constant 0 : i32
    return %arg0, %c0_i32, %c0_i32_0 : i32, i32, i32
  }
  func.func @transform_1(%arg0: i32) -> (i32, i32) {
    %c0_i32 = arith.constant 0 : i32
    %c0_i32_0 = arith.constant 0 : i32
    %c0_i32_1 = arith.constant 0 : i32
    return %c0_i32, %c0_i32_0 : i32, i32
  }
  func.func @transform_2(%arg0: i32) -> (i32, i32) {
    %c0_i32 = arith.constant 0 : i32
    %c0_i32_0 = arith.constant 0 : i32
    %c0_i32_1 = arith.constant 0 : i32
    return %c0_i32, %c0_i32_0 : i32, i32
  }
  func.func @transform_3(%arg0: i32) -> (i32, i32) {
    %c0_i32 = arith.constant 0 : i32
    %c0_i32_0 = arith.constant 0 : i32
    %c0_i32_1 = arith.constant 0 : i32
    return %c0_i32, %c0_i32_0 : i32, i32
  }
  func.func @transform_4(%arg0: i32) -> (i32, i32) {
    %c0_i32 = arith.constant 0 : i32
    %c0_i32_0 = arith.constant 0 : i32
    %c0_i32_1 = arith.constant 0 : i32
    return %c0_i32, %c0_i32_0 : i32, i32
  }
  func.func @transform_5(%arg0: i32) -> (i32, i32) {
    %c0_i32 = arith.constant 0 : i32
    %c0_i32_0 = arith.constant 0 : i32
    %c0_i32_1 = arith.constant 0 : i32
    return %c0_i32, %c0_i32_0 : i32, i32
  }
  func.func @transform_6(%arg0: i32) -> (i32, i32, i32) {
    %c0_i32 = arith.constant 0 : i32
    %c0_i32_0 = arith.constant 0 : i32
    %c0_i32_1 = arith.constant 0 : i32
    return %arg0, %c0_i32, %c0_i32_0 : i32, i32, i32
  }
}

</mosaic_0001>

<bundles_post_ra>
// kernel: tpu_custom_call.1
= control target key start
LH: loop header
LB: loop body
LE: loop exit
PB: predicated region body
PF: predicated region fallthrough
CT: control target
= control target key end

     0   :  { %s2669_s0 = inlined_call_operand.hbm [shape: f32[2,32,256], index: 0, kind: input, shape index: {}]   ;;  %s2670_s1 = inlined_call_operand.vmem [shape: bf16[4,32], index: 1, kind: input, shape index: {}]   ;;  %s2671_s2 = inlined_call_operand.vmem [shape: bf16[4,32], index: 2, kind: input, shape index: {}]   ;;  %s2672_s3 = inlined_call_operand.vmem [shape: bf16[4,32], index: 3, kind: input, shape index: {}]   ;;  %s2673_s4 = inlined_call_operand.vmem [shape: bf16[32,4], index: 4, kind: input, shape index: {}]   ;;  %s2674_s5 = inlined_call_operand.<no memory space> [shape: f32[1,1], index: 5, kind: input, shape index: {}]   ;;  %s2675_s6 = inlined_call_operand.hbm [shape: f32[2,32,256], index: 6, kind: output, shape index: {}]  }
   0x1   :  { %11 = sst [smem:[#allocation2]] %s2674_s5 }
   0x2   :  { %12 = vsyncpa [#allocation4], 0 }
   0x3   :  { %14 = vsyncpa [#allocation4 + $0x1], 0 }
   0x4   :  { %15 = vsyncpa [#allocation5], 0 }
   0x5   :  { %17 = vsyncpa [#allocation5 + $0x1], 0  ;;  %s1897_s23 = smov 0   ;;  %s1899_s24 = smov 0  }
   0x6   :  { %s1901_s25 = smov 0   ;;  %s1903_s26 = smov 0  }
   0x7 LB: > { %s1918_s5 = sadd.s32 4294967295, %s1850_s26   ;;  %s1464_s27 = sadd.s32 4294967294, %s1850_s26   ;;  %s1850_s26 = sphi %s1903_s26, %s2766_s26   ;;  %s1846_s25 = sphi %s1901_s25, %s2765_s25   ;;  %s1842_s24 = sphi %s1899_s24, %s2764_s24   ;;  %s1838_s23 = sphi %s1897_s23, %s2763_s23  }
   0x8   : > { %s1922_s28 = sadd.s32 1, %s1850_s26   ;;  %s30_s29 = sadd.s32 1, %s1846_s25 }
   0x9   : > { %s27_s30 = ssub.s32 %s1850_s26, %s1922_s28  ;;  %p37_p0 = scmp.ne.s32.totalorder %s1846_s25, %s1842_s24 }
   0xa   : > { %p28_p1 = scmp.eq.s32.totalorder %s27_s30, 0  ;;  %p38_p2 = scmp.eq.s32.totalorder %s1850_s26, 0 }
   0xb   : > { %p43_p3 = scmp.ne.s32.totalorder %s1842_s24, %s1838_s23  ;;  %p44_p4 = scmp.eq.s32.totalorder %s1918_s5, 0 }
   0xc   : > { %s1934_s7 = scalar_select %p28_p1, %s1846_s25, %s30_s29  }
   0xd   : > { %p1936_p5 = por %p38_p2, %p37_p0  ;;  %p1940_p6 = por %p44_p4, %p43_p3 }
   0xe   : > { %p172_p7 = scmp.eq.s32.totalorder %s1918_s5, 1  ;;  %p178_p8 = scmp.eq.s32.totalorder %s1464_s27, 1 }
   0xf   : > { %s2698_s9 = scalar_select %p1940_p6, 1, 0 }
  0x10   : > { %p1517_p10 = scmp.lt.s32.totalorder %s1850_s26, 2  ;;  %p1947_p11 = por %p172_p7, %p37_p0 }
  0x11   : > { %p1951_p12 = por %p178_p8, %p43_p3  ;;  %s213_s12 = sand.u32 1, %s1846_s25  }
  0x12   : > { %s2699_s10 = scalar_select %p1947_p11, 1, 0 }
  0x13   : > { %s2700_s11 = scalar_select %p1951_p12, 1, 0 }
  0x14   : > { %s1503_s13 = sshll.u32 %s1850_s26, 10  ;;  %s1467_s14 = sshll.u32 %s213_s12, 6 }
  0x15   : > { %s1960_s17 = scalar_lea.hbm %s2669_s0, %s1503_s13  ;;  %s217_s18 = scalar_lea.vmem [#allocation3], %s1467_s14 }
  0x16   : > { %s224_s19 = sshll.u32 %s217_s18, 4  ;;  %p1964_p13 = pnand %p1517_p10, %p1936_p5  ;;  %s1968_s19 = int_to_ptr.vmem [resolvable:$true] %s224_s19 }
  0x17   : > { %s1970_s21 = scalar_lea.sflag [#allocation4], %s213_s12  ;;  %s1758_s22 = scalar_lea.hbm %s1960_s17, 1024 }
  0x18   : > { %p1759_p0 = scmp.ne.s32.totalorder %s1960_s17, %s1758_s22  ;;  %p1760_p1 = pneg %p1964_p13 }
  0x19   : > { %s1763_s30 = scalar_lea.hbm %s2669_s0, 2048  ;;  %p1764_p4 = scmp.lt.s32.totalorder %s1960_s17, %s2669_s0 }
  0x1a   : > { %p1761_p2 = pnand %p1760_p1, %p1759_p0  ;;  %p1765_p5 = scmp.lt.s32.totalorder %s1763_s30, %s1758_s22 }
  0x1c   : > { %p1762_p3 = pneg %p1761_p2  ;;  %p1766_p7 = por %p1765_p5, %p1764_p4 }
  0x1e   : > { %p1767_p8 = pnand %p1766_p7, %p1762_p3 }
  0x20   : > { %1770 = shalt.err (!%p1767_p8)
}
  0x21   : > { %s1771_s12 = scalar_lea.vmem %s1968_s19, 1024  ;;  %s1852_s14 = smov [#allocation3]  }
  0x22   : > { %p1772_p10 = scmp.ne.s32.totalorder %s1968_s19, %s1771_s12  ;;  %s1776_s15 = sshll.u32 %s1852_s14, 4  ;;  %s1777_s15 = int_to_ptr.vmem [resolvable:$false] %s1776_s15 }
  0x23   : > { %s1778_s16 = scalar_lea.vmem %s1777_s15, 2048  ;;  %p1779_p2 = scmp.lt.s32.totalorder %s1968_s19, %s1777_s15 }
  0x24   : > { %p1774_p9 = pnand %p1772_p10, %p1760_p1  ;;  %p1780_p12 = scmp.lt.s32.totalorder %s1778_s16, %s1771_s12 }
  0x26   : > { %p1775_p0 = pneg %p1774_p9  ;;  %p1781_p11 = por %p1780_p12, %p1779_p2 }
  0x28   : > { %p1782_p6 = pnand %p1781_p11, %p1775_p0 }
  0x2a   : > { %1785 = shalt.err (!%p1782_p6)
}
  0x2b   : > { %s1853_s18 = smov 256   ;;  %s1854_s22 = smov 16  }
  0x2c   : > { %1512 = dma.hbm_to_vmem [thread:$0]  (!%p1964_p13), %s1960_s17, 1024, %s1968_s19, %s1970_s21, %s1853_s18, %s1853_s18, %s1854_s22  }
  0x2d   : > { %p1470_p9 = scmp.ge.s32.totalorder %s1850_s26, 1  ;;  %p232_p1 = scmp.lt.s32.totalorder %s1850_s26, 3 }
  0x2f   : > { %p233_p3 = pnand %p1470_p9, %p232_p1 }
  0x31   : > { %236 = sbr.rel (%p233_p3) target bundleno = 1495 (0x5d7), region = 44 }
  0x36   : > { %s1994_s27 = sand.u32 1, %s1842_s24   ;;  %p2702_p6 = scmp.ne.s32.totalorder %s2698_s9, 0 }
  0x37   : > { %s1471_s29 = sshll.u32 %s1994_s27, 6  ;;  %s239_s30 = scalar_lea.sflag [#allocation4], %s1994_s27 }
  0x38   : > { %s2000_s8 = scalar_lea.vmem [#allocation3], %s1471_s29 }
  0x39   : > { %1829 = dma.done.wait (%p2702_p6), %s239_s30, 1024  }
  0x3a   : > { %1831 = vsyncadd (%p2702_p6), %s239_s30, 4294966272  ;;  %v2678_v0 = vmov 0   ;;  %v277_v1 = vld [vmem:[%s2000_s8 + $0x28] sm:$0xff]  ;;  %v279_v2 = vld [vmem:[%s2000_s8 + $0x38] sm:$0xff]  ;;  %vm285_vm0 = vcmask 261120   ;;  %vm505_vm1 = vcmask 1041408  }
  0x3b   : > { %321 = vmatprep.mubr.bf16.mxu0 %v2678_v0  ;;  %544 = vmatprep.mubr.bf16.mxu1 %v2678_v0  ;;  %v276_v3 = vld [vmem:[%s2000_s8 + $0x20] sm:$0xff]  ;;  %v283_v4 = vpack.c.bf16 %v279_v2, %v277_v1  ;;  %v278_v5 = vld [vmem:[%s2000_s8 + $0x30] sm:$0xff]  ;;  %v273_v6 = vld [vmem:[%s2000_s8 + $0x8] sm:$0xff]  ;;  %vm456_vm2 = vcmask 31744   ;;  %s1351_s18 = sld [smem:[#allocation2]]  ;;  %s2602_s22 = scalar_lea.vmem [#allocation6], %s1471_s29 }
  0x3c   : > { %v275_v7 = vld [vmem:[%s2000_s8 + $0x18] sm:$0xff]  ;;  %v282_v8 = vpack.c.bf16 %v278_v5, %v276_v3  ;;  %v272_v10 = vld [vmem:[%s2000_s8] sm:$0xff]  ;;  %v274_v11 = vld [vmem:[%s2000_s8 + $0x10] sm:$0xff]  ;;  %s1391_s29 = sshll.u32 %s2602_s22, 4  ;;  %s1504_s30 = sshll.u32 %s1918_s5, 10  ;;  %s2616_s29 = int_to_ptr.vmem [resolvable:$true] %s1391_s29 }
  0x3d   : > { %v281_v9 = vpack.c.bf16 %v275_v7, %v273_v6  ;;  %301 = vmatprep.subr.bf16.mxu0 %v283_v4  ;;  %v280_v12 = vpack.c.bf16 %v274_v11, %v272_v10  ;;  %v284_v13 = vld [vmem:[%s2670_s1] sm:$0x3]  ;;  %s2623_s19 = scalar_lea.hbm %s2675_s6, %s1504_s30  ;;  %s1378_s5 = scalar_lea.sflag [#allocation5], %s1994_s27 }
  0x3e   : > { %302 = vmatpush1.bf16.msra.mxu0 %v282_v8  ;;  %v332_v14 = vld [vmem:[%s2671_s2] sm:$0x3]  ;;  %s1786_s20 = scalar_lea.vmem %s2616_s29, 1024  ;;  %p2760_p12 = scmp.ne.s32.totalorder %s2699_s10, 0 }
  0x3f   : > { %303 = vmatprep.subr.bf16.mxu0 %v281_v9  ;;  %p1787_p11 = scmp.ne.s32.totalorder %s2616_s29, %s1786_s20  ;;  %s1856_s21 = smov [#allocation6]  }
  0x40   : > { %s1790_s13 = sshll.u32 %s1856_s21, 4  ;;  %s1791_s13 = int_to_ptr.vmem [resolvable:$false] %s1790_s13 }
  0x41   : > { %p1788_p13 = pnand %p1787_p11, %p2760_p12  ;;  %s1792_s12 = scalar_lea.vmem %s1791_s13, 2048 }
  0x42   : > { %304 = vmatpush1.bf16.msra.mxu0 %v280_v12  ;;  %p1793_p5 = scmp.lt.s32.totalorder %s2616_s29, %s1791_s13  ;;  %p1794_p7 = scmp.lt.s32.totalorder %s1792_s12, %s1786_s20 }
  0x43   : > { %348 = vmatprep.subr.bf16.mxu0 %v283_v4  ;;  %p1789_p4 = pneg %p1788_p13 }
  0x44   : > { %p1795_p8 = por %p1794_p7, %p1793_p5 }
  0x45   : > { %1473 = vmatmul.mubr.msk.bf16.vlgmr.msra.gmra.mxu0 %vm285_vm0, %v284_v13 }
  0x46   : > { %349 = vmatpush1.bf16.msra.mxu0 %v282_v8  ;;  %368 = vmatprep.mubr.bf16.mxu0 %v2678_v0  ;;  %p1796_p10 = pnand %p1795_p8, %p1789_p4 }
  0x47   : > { %350 = vmatprep.subr.bf16.mxu0 %v281_v9 }
  0x4a   : > { %351 = vmatpush1.bf16.msra.mxu0 %v280_v12 }
  0x4b   : > { %395 = vmatprep.subr.bf16.mxu0 %v283_v4 }
  0x4d   : > { %1474 = vmatmul.mubr.msk.bf16.vlgmr.msra.gmra.mxu0 %vm285_vm0, %v332_v14 }
  0x4e   : > { %396 = vmatpush1.bf16.msra.mxu0 %v282_v8  ;;  %415 = vmatprep.mubr.bf16.mxu0 %v2678_v0 }
  0x4f   : > { %397 = vmatprep.subr.bf16.mxu0 %v281_v9 }
  0x52   : > { %398 = vmatpush1.bf16.msra.mxu0 %v280_v12 }
 0x105   : > { %v323_v15 = vpop.f32.mrf.mxu0 }
 0x106   : > { %v330_v16 = vpack.c.bf16 %v323_v15, %v323_v15 }
 0x107   : > { %v325_v17 = vpop.f32.mrf.mxu0 }
 0x108   : > { %424 = vxpose.xlu0.c.b16.start.end [1/1] (short) %v330_v16, 128  ;;  %v331_v27 = vpack.c.bf16 %v325_v17, %v325_v17 }
 0x109   : > { %v327_v18 = vpop.f32.mrf.mxu0 }
 0x10b   : > { %v328_v19 = vpop.f32.mrf.mxu0 }
 0x10d   : > { %v370_v20 = vpop.f32.mrf.mxu0 }
 0x10e   : > { %v377_v21 = vpack.c.bf16 %v370_v20, %v370_v20 }
 0x10f   : > { %v372_v22 = vpop.f32.mrf.mxu0 }
 0x110   : > { %v378_v23 = vpack.c.bf16 %v372_v22, %v372_v22  ;;  %v507_v24 = vsel %vm505_vm1, %v377_v21, 0 }
 0x111   : > { %v374_v25 = vpop.f32.mrf.mxu0 }
 0x112   : > { %1476 = vmatprep.subr.msk.bf16.mxu1 %vm505_vm1, %v378_v23 }
 0x113   : > { %v375_v26 = vpop.f32.mrf.mxu0  ;;  %527 = vmatpush1.bf16.msra.mxu1 %v507_v24 }
 0x125   : > { %440 = vxpose.xlu0.c.b16.start.end [1/1] (short) %v331_v27, 128 }
 0x16a   : > { %v432_v28 = vpop.trf.xlu0 }
 0x16b   : > { %1477 = vmatmul.mubr.msk.bf16.vlgmr.msra.gmra.mxu1 %vm456_vm2, %v432_v28 }
 0x16c   : > { %554 = vmatprep.mubr.bf16.mxu1 %v2678_v0 }
 0x16e   : > { %v433_v29 = vpop.trf.xlu0 }
 0x172   : > { %v434_v30 = vpop.trf.xlu0 }
 0x173   : > { %1478 = vmatmul.mubr.msk.bf16.gmra.mxu1 %vm456_vm2, %v433_v29 }
 0x174   : > { %564 = vmatprep.mubr.bf16.mxu1 %v2678_v0 }
 0x176   : > { %v435_v31 = vpop.trf.xlu0 }
 0x17a   : > { %v436_v32 = vpop.trf.xlu0 }
 0x17b   : > { %1479 = vmatmul.mubr.msk.bf16.gmra.mxu1 %vm456_vm2, %v434_v30 }
 0x17c   : > { %574 = vmatprep.mubr.bf16.mxu1 %v2678_v0 }
 0x17e   : > { %v437_v33 = vpop.trf.xlu0 }
 0x182   : > { %v438_v34 = vpop.trf.xlu0 }
 0x183   : > { %1480 = vmatmul.mubr.msk.bf16.gmra.mxu1 %vm456_vm2, %v435_v31 }
 0x184   : > { %584 = vmatprep.mubr.bf16.mxu1 %v2678_v0 }
 0x186   : > { %v439_v35 = vpop.trf.xlu0 }
 0x18a   : > { %v448_v36 = vpop.trf.xlu0 }
 0x18b   : > { %1481 = vmatmul.mubr.msk.bf16.gmra.mxu1 %vm456_vm2, %v436_v32 }
 0x18c   : > { %594 = vmatprep.mubr.bf16.mxu1 %v2678_v0 }
 0x18e   : > { %v449_v37 = vpop.trf.xlu0 }
 0x192   : > { %v450_v38 = vpop.trf.xlu0 }
 0x193   : > { %1482 = vmatmul.mubr.msk.bf16.gmra.mxu1 %vm456_vm2, %v437_v33 }
 0x194   : > { %604 = vmatprep.mubr.bf16.mxu1 %v2678_v0 }
 0x196   : > { %v451_v39 = vpop.trf.xlu0 }
 0x19a   : > { %v452_v40 = vpop.trf.xlu0 }
 0x19b   : > { %1483 = vmatmul.mubr.msk.bf16.gmra.mxu1 %vm456_vm2, %v438_v34 }
 0x19c   : > { %614 = vmatprep.mubr.bf16.mxu1 %v2678_v0 }
 0x19e   : > { %v453_v41 = vpop.trf.xlu0 }
 0x1a2   : > { %v454_v42 = vpop.trf.xlu0 }
 0x1a3   : > { %1484 = vmatmul.mubr.msk.bf16.gmra.mxu1 %vm456_vm2, %v439_v35 }
 0x1a4   : > { %624 = vmatprep.mubr.bf16.mxu1 %v2678_v0 }
 0x1a6   : > { %v455_v43 = vpop.trf.xlu0 }
 0x1ab   : > { %1485 = vmatmul.mubr.msk.bf16.gmra.mxu1 %vm456_vm2, %v448_v36 }
 0x1ac   : > { %634 = vmatprep.mubr.bf16.mxu1 %v2678_v0 }
 0x1b3   : > { %1486 = vmatmul.mubr.msk.bf16.gmra.mxu1 %vm456_vm2, %v449_v37 }
 0x1b4   : > { %644 = vmatprep.mubr.bf16.mxu1 %v2678_v0 }
 0x1bb   : > { %1487 = vmatmul.mubr.msk.bf16.gmra.mxu1 %vm456_vm2, %v450_v38 }
 0x1bc   : > { %654 = vmatprep.mubr.bf16.mxu1 %v2678_v0 }
 0x1c3   : > { %1488 = vmatmul.mubr.msk.bf16.gmra.mxu1 %vm456_vm2, %v451_v39 }
 0x1c4   : > { %664 = vmatprep.mubr.bf16.mxu1 %v2678_v0 }
 0x1cb   : > { %1489 = vmatmul.mubr.msk.bf16.gmra.mxu1 %vm456_vm2, %v452_v40 }
 0x1cc   : > { %674 = vmatprep.mubr.bf16.mxu1 %v2678_v0 }
 0x1d3   : > { %1490 = vmatmul.mubr.msk.bf16.gmra.mxu1 %vm456_vm2, %v453_v41 }
 0x1d4   : > { %684 = vmatprep.mubr.bf16.mxu1 %v2678_v0 }
 0x1db   : > { %1491 = vmatmul.mubr.msk.bf16.gmra.mxu1 %vm456_vm2, %v454_v42 }
 0x1dc   : > { %694 = vmatprep.mubr.bf16.mxu1 %v2678_v0 }
 0x1e3   : > { %1492 = vmatmul.mubr.msk.bf16.gmra.mxu1 %vm456_vm2, %v455_v43 }
 0x22b   : > { %v2059_v44 = vpop.f32.mrf.mxu1 }
 0x22d   : > { %v2061_v45 = vpop.f32.mrf.mxu1 }
 0x22e   : > { %v705_v46 = vmax.f32 %v2059_v44, %v2061_v45 }
 0x22f   : > { %v2065_v47 = vpop.f32.mrf.mxu1 }
 0x230   : > { %706 = vmax.xlane.f32.xlu1 %v705_v46 }
 0x231   : > { %v2067_v48 = vpop.f32.mrf.mxu1 }
 0x232   : > { %v708_v49 = vmax.f32 %v2065_v47, %v2067_v48 }
 0x233   : > { %v2071_v50 = vpop.f32.mrf.mxu1 }
 0x234   : > { %709 = vmax.xlane.f32.xlu1 %v708_v49 }
 0x235   : > { %v2073_v51 = vpop.f32.mrf.mxu1 }
 0x236   : > { %v711_v52 = vmax.f32 %v2071_v50, %v2073_v51 }
 0x237   : > { %v2077_v53 = vpop.f32.mrf.mxu1 }
 0x238   : > { %712 = vmax.xlane.f32.xlu1 %v711_v52 }
 0x239   : > { %v2079_v54 = vpop.f32.mrf.mxu1 }
 0x23a   : > { %v714_v55 = vmax.f32 %v2077_v53, %v2079_v54 }
 0x23b   : > { %v2083_v56 = vpop.f32.mrf.mxu1 }
 0x23c   : > { %715 = vmax.xlane.f32.xlu1 %v714_v55 }
 0x23d   : > { %v2085_v57 = vpop.f32.mrf.mxu1 }
 0x23e   : > { %v717_v58 = vmax.f32 %v2083_v56, %v2085_v57 }
 0x23f   : > { %v2089_v59 = vpop.f32.mrf.mxu1 }
 0x240   : > { %718 = vmax.xlane.f32.xlu0 %v717_v58 }
 0x241   : > { %v2091_v60 = vpop.f32.mrf.mxu1 }
 0x242   : > { %v720_v61 = vmax.f32 %v2089_v59, %v2091_v60 }
 0x243   : > { %v2095_v62 = vpop.f32.mrf.mxu1 }
 0x244   : > { %721 = vmax.xlane.f32.xlu1 %v720_v61 }
 0x245   : > { %v2097_v63 = vpop.f32.mrf.mxu1 }
 0x246   : > { %v723_v1 = vmax.f32 %v2095_v62, %v2097_v63 }
 0x247   : > { %v2101_v2 = vpop.f32.mrf.mxu1 }
 0x248   : > { %724 = vmax.xlane.f32.xlu1 %v723_v1 }
 0x249   : > { %v2103_v3 = vpop.f32.mrf.mxu1 }
 0x24a   : > { %v726_v4 = vmax.f32 %v2101_v2, %v2103_v3 }
 0x24b   : > { %v2107_v5 = vpop.f32.mrf.mxu1 }
 0x24c   : > { %727 = vmax.xlane.f32.xlu1 %v726_v4 }
 0x24d   : > { %v2109_v6 = vpop.f32.mrf.mxu1 }
 0x24e   : > { %v729_v7 = vmax.f32 %v2107_v5, %v2109_v6 }
 0x24f   : > { %v2113_v8 = vpop.f32.mrf.mxu1 }
 0x250   : > { %730 = vmax.xlane.f32.xlu1 %v729_v7 }
 0x251   : > { %v2115_v9 = vpop.f32.mrf.mxu1 }
 0x252   : > { %v732_v10 = vmax.f32 %v2113_v8, %v2115_v9 }
 0x253   : > { %v2119_v11 = vpop.f32.mrf.mxu1 }
 0x254   : > { %733 = vmax.xlane.f32.xlu1 %v732_v10 }
 0x255   : > { %v2121_v12 = vpop.f32.mrf.mxu1 }
 0x256   : > { %v735_v13 = vmax.f32 %v2119_v11, %v2121_v12 }
 0x257   : > { %v2125_v14 = vpop.f32.mrf.mxu1 }
 0x258   : > { %736 = vmax.xlane.f32.xlu1 %v735_v13 }
 0x259   : > { %v2127_v15 = vpop.f32.mrf.mxu1 }
 0x25a   : > { %v738_v16 = vmax.f32 %v2125_v14, %v2127_v15 }
 0x25b   : > { %v2131_v17 = vpop.f32.mrf.mxu1 }
 0x25c   : > { %739 = vmax.xlane.f32.xlu1 %v738_v16 }
 0x25d   : > { %v2133_v18 = vpop.f32.mrf.mxu1 }
 0x25e   : > { %v741_v19 = vmax.f32 %v2131_v17, %v2133_v18 }
 0x25f   : > { %v2137_v20 = vpop.f32.mrf.mxu1 }
 0x260   : > { %742 = vmax.xlane.f32.xlu1 %v741_v19 }
 0x261   : > { %v2139_v21 = vpop.f32.mrf.mxu1 }
 0x263   : > { %v2141_v22 = vpop.f32.mrf.mxu1 }
 0x264   : > { %2703 = vst [vmem:[#allocation9_spill] sm:$0xff] %v2141_v22 }
 0x265   : > { %v2143_v23 = vpop.f32.mrf.mxu1 }
 0x266   : > { %2704 = vst [vmem:[#allocation10_spill] sm:$0xff] %v2143_v23 }
 0x267   : > { %v2145_v24 = vpop.f32.mrf.mxu1 }
 0x268   : > { %2705 = vst [vmem:[#allocation11_spill] sm:$0xff] %v2145_v24 }
 0x269   : > { %v2147_v25 = vpop.f32.mrf.mxu1 }
 0x26a   : > { %2706 = vst [vmem:[#allocation12_spill] sm:$0xff] %v2147_v25 }
 0x26b   : > { %v2149_v26 = vpop.f32.mrf.mxu1 }
 0x26d   : > { %v2151_v27 = vpop.f32.mrf.mxu1 }
 0x26e   : > { %v753_v28 = vmax.f32 %v2149_v26, %v2151_v27 }
 0x26f   : > { %v2155_v29 = vpop.f32.mrf.mxu1 }
 0x270   : > { %754 = vmax.xlane.f32.xlu1 %v753_v28 }
 0x271   : > { %v2157_v30 = vpop.f32.mrf.mxu1 }
 0x272   : > { %v756_v31 = vmax.f32 %v2155_v29, %v2157_v30 }
 0x273   : > { %v2161_v32 = vpop.f32.mrf.mxu1 }
 0x274   : > { %757 = vmax.xlane.f32.xlu1 %v756_v31  ;;  %v744_v31 = vmax.f32 %v2137_v20, %v2139_v21 }
 0x275   : > { %v2163_v33 = vpop.f32.mrf.mxu1 }
 0x276   : > { %v759_v34 = vmax.f32 %v2161_v32, %v2163_v33 }
 0x277   : > { %v2167_v35 = vpop.f32.mrf.mxu1 }
 0x278   : > { %760 = vmax.xlane.f32.xlu1 %v759_v34 }
 0x279   : > { %v2169_v36 = vpop.f32.mrf.mxu1 }
 0x27a   : > { %v762_v37 = vmax.f32 %v2167_v35, %v2169_v36 }
 0x27b   : > { %v2173_v38 = vpop.f32.mrf.mxu1 }
 0x27c   : > { %763 = vmax.xlane.f32.xlu1 %v762_v37 }
 0x27d   : > { %v2175_v39 = vpop.f32.mrf.mxu1 }
 0x27e   : > { %v765_v40 = vmax.f32 %v2173_v38, %v2175_v39 }
 0x27f   : > { %v2179_v41 = vpop.f32.mrf.mxu1 }
 0x280   : > { %766 = vmax.xlane.f32.xlu1 %v765_v40 }
 0x281   : > { %v2181_v42 = vpop.f32.mrf.mxu1 }
 0x282   : > { %v768_v43 = vmax.f32 %v2179_v41, %v2181_v42 }
 0x283   : > { %v2185_v46 = vpop.f32.mrf.mxu1 }
 0x284   : > { %769 = vmax.xlane.f32.xlu1 %v768_v43  ;;  %v747_v43 = vmax.f32 %v2141_v22, %v2143_v23 }
 0x285   : > { %v2187_v49 = vpop.f32.mrf.mxu1 }
 0x286   : > { %v771_v52 = vmax.f32 %v2185_v46, %v2187_v49 }
 0x287   : > { %v2191_v55 = vpop.f32.mrf.mxu1 }
 0x288   : > { %772 = vmax.xlane.f32.xlu1 %v771_v52 }
 0x289   : > { %v2193_v58 = vpop.f32.mrf.mxu1 }
 0x28a   : > { %v774_v61 = vmax.f32 %v2191_v55, %v2193_v58 }
 0x28b   : > { %v2197_v1 = vpop.f32.mrf.mxu1 }
 0x28c   : > { %775 = vmax.xlane.f32.xlu1 %v774_v61 }
 0x28d   : > { %v2199_v4 = vpop.f32.mrf.mxu1 }
 0x28e   : > { %v777_v7 = vmax.f32 %v2197_v1, %v2199_v4 }
 0x28f   : > { %v2203_v10 = vpop.f32.mrf.mxu1 }
 0x290   : > { %778 = vmax.xlane.f32.xlu1 %v777_v7 }
 0x291   : > { %v2205_v13 = vpop.f32.mrf.mxu1 }
 0x292   : > { %v780_v16 = vmax.f32 %v2203_v10, %v2205_v13 }
 0x293   : > { %v2209_v19 = vpop.f32.mrf.mxu1 }
 0x294   : > { %781 = vmax.xlane.f32.xlu1 %v780_v16  ;;  %v750_v16 = vmax.f32 %v2145_v24, %v2147_v25 }
 0x295   : > { %v2211_v28 = vpop.f32.mrf.mxu1 }
 0x296   : > { %v783_v34 = vmax.f32 %v2209_v19, %v2211_v28 }
 0x297   : > { %v2217_v37 = vpop.f32.mrf.mxu1 }
 0x298   : > { %2707 = vst [vmem:[#allocation13_spill] sm:$0xff] %v2217_v37  ;;  %745 = vmax.xlane.f32.xlu1 %v744_v31  ;;  %784 = vmax.xlane.f32.xlu0 %v783_v34 }
 0x299   : > { %v2219_v40 = vpop.f32.mrf.mxu1 }
 0x29a   : > { %2708 = vst [vmem:[#allocation14_spill] sm:$0xff] %v2219_v40  ;;  %v786_v52 = vmax.f32 %v2217_v37, %v2219_v40 }
 0x29b   : > { %v2225_v61 = vpop.f32.mrf.mxu1 }
 0x29c   : > { %2709 = vst [vmem:[#allocation15_spill] sm:$0xff] %v2225_v61  ;;  %748 = vmax.xlane.f32.xlu1 %v747_v43  ;;  %787 = vmax.xlane.f32.xlu0 %v786_v52 }
 0x29d   : > { %v2227_v7 = vpop.f32.mrf.mxu1 }
 0x29e   : > { %2710 = vst [vmem:[#allocation16_spill] sm:$0xff] %v2227_v7  ;;  %v789_v31 = vmax.f32 %v2225_v61, %v2227_v7 }
 0x29f   : > { %v2233_v34 = vpop.f32.mrf.mxu1 }
 0x2a0   : > { %2711 = vst [vmem:[#allocation17_spill] sm:$0xff] %v2233_v34  ;;  %751 = vmax.xlane.f32.xlu1 %v750_v16  ;;  %790 = vmax.xlane.f32.xlu0 %v789_v31 }
 0x2a1   : > { %v2235_v0 = vpop.f32.mrf.mxu1 }
 0x2a2   : > { %2712 = vst [vmem:[#allocation18_spill] sm:$0xff] %v2235_v0  ;;  %v792_v40 = vmax.f32 %v2233_v34, %v2235_v0 }
 0x2a3   : > { %v2239_v37 = vpop.f32.mrf.mxu1 }
 0x2a4   : > { %2713 = vst [vmem:[#allocation19_spill] sm:$0xff] %v2239_v37  ;;  %793 = vmax.xlane.f32.xlu0 %v792_v40 }
 0x2a5   : > { %v2241_v43 = vpop.f32.mrf.mxu1 }
 0x2a6   : > { %2714 = vst [vmem:[#allocation20_spill] sm:$0xff] %v2241_v43  ;;  %v795_v52 = vmax.f32 %v2239_v37, %v2241_v43 }
 0x2a7   : > { %v2245_v25 = vpop.f32.mrf.mxu1 }
 0x2a8   : > { %796 = vmax.xlane.f32.xlu0 %v795_v52 }
 0x2a9   : > { %v2247_v7 = vpop.f32.mrf.mxu1 }
 0x2aa   : > { %v798_v16 = vmax.f32 %v2245_v25, %v2247_v7 }
 0x2ac   : > { %799 = vmax.xlane.f32.xlu0 %v798_v16  ;;  %v379_v16 = vld [vmem:[%s2672_s3] sm:$0x3] }
 0x2ad   : > { %1475 = vmatmul.mubr.msk.bf16.vlgmr.msra.gmra.mxu0 %vm285_vm0, %v379_v16 }
 0x2b9   : > { %v707_v31 = vpop.xlane.xlu1 %706 }
 0x2ba   : > { %v801_v0 = vsub.f32 %v2059_v44, %v707_v31  ;;  %v802_v34 = vsub.f32 %v2061_v45, %v707_v31 }
 0x2bc   : > { %v865_v40 = vmul.f32 1.442695, %v801_v0  ;;  %v867_v61 = vmul.f32 1.442695, %v802_v34 }
 0x2bd   : > { %v710_v24 = vpop.xlane.xlu1 %709 }
 0x2be   : > { %1558 = vpow2.f32 %v865_v40  ;;  %v803_v43 = vsub.f32 %v2065_v47, %v710_v24  ;;  %v804_v37 = vsub.f32 %v2067_v48, %v710_v24 }
 0x2bf   : > { %1560 = vpow2.f32 %v867_v61 }
 0x2c0   : > { %v869_v52 = vmul.f32 1.442695, %v803_v43  ;;  %v871_v23 = vmul.f32 1.442695, %v804_v37 }
 0x2c1   : > { %v713_v22 = vpop.xlane.xlu1 %712 }
 0x2c2   : > { %1562 = vpow2.f32 %v869_v52  ;;  %v805_v44 = vsub.f32 %v2071_v50, %v713_v22  ;;  %v806_v0 = vsub.f32 %v2073_v51, %v713_v22 }
 0x2c3   : > { %1564 = vpow2.f32 %v871_v23 }
 0x2c4   : > { %v873_v45 = vmul.f32 1.442695, %v805_v44  ;;  %v875_v47 = vmul.f32 1.442695, %v806_v0 }
 0x2c5   : > { %v716_v34 = vpop.xlane.xlu1 %715 }
 0x2c6   : > { %1566 = vpow2.f32 %v873_v45  ;;  %v807_v48 = vsub.f32 %v2077_v53, %v716_v34  ;;  %v808_v24 = vsub.f32 %v2079_v54, %v716_v34 }
 0x2c7   : > { %1568 = vpow2.f32 %v875_v47 }
 0x2c8   : > { %v877_v37 = vmul.f32 1.442695, %v807_v48  ;;  %v879_v61 = vmul.f32 1.442695, %v808_v24 }
 0x2c9   : > { %v719_v43 = vpop.xlane.xlu0 %718 }
 0x2ca   : > { %1570 = vpow2.f32 %v877_v37  ;;  %v809_v50 = vsub.f32 %v2083_v56, %v719_v43  ;;  %v810_v51 = vsub.f32 %v2085_v57, %v719_v43 }
 0x2cb   : > { %v2265_v22 = vpop.eup %1558  ;;  %1572 = vpow2.f32 %v879_v61 }
 0x2cc   : > { %v2267_v23 = vpop.eup %1560  ;;  %v881_v31 = vmul.f32 1.442695, %v809_v50  ;;  %v883_v40 = vmul.f32 1.442695, %v810_v51 }
 0x2cd   : > { %v722_v52 = vpop.xlane.xlu1 %721  ;;  %v993_v53 = vadd.f32 %v2267_v23, %v2265_v22 }
 0x2ce   : > { %1574 = vpow2.f32 %v881_v31  ;;  %v811_v54 = vsub.f32 %v2089_v59, %v722_v52  ;;  %v812_v16 = vsub.f32 %v2091_v60, %v722_v52 }
 0x2cf   : > { %v2273_v44 = vpop.eup %1562  ;;  %1576 = vpow2.f32 %v883_v40  ;;  %994 = vadd.xlane.f32.xlu1 %v993_v53 }
 0x2d0   : > { %v2275_v56 = vpop.eup %1564  ;;  %v885_v57 = vmul.f32 1.442695, %v811_v54  ;;  %v887_v0 = vmul.f32 1.442695, %v812_v16 }
 0x2d1   : > { %v725_v47 = vpop.xlane.xlu1 %724  ;;  %v996_v34 = vadd.f32 %v2275_v56, %v2273_v44 }
 0x2d2   : > { %1578 = vpow2.f32 %v885_v57  ;;  %v813_v60 = vsub.f32 %v2095_v62, %v725_v47  ;;  %v814_v48 = vsub.f32 %v2097_v63, %v725_v47 }
 0x2d3   : > { %v2285_v24 = vpop.eup %1566  ;;  %1580 = vpow2.f32 %v887_v0  ;;  %997 = vadd.xlane.f32.xlu1 %v996_v34 }
 0x2d4   : > { %v2287_v37 = vpop.eup %1568  ;;  %v889_v61 = vmul.f32 1.442695, %v813_v60  ;;  %v891_v43 = vmul.f32 1.442695, %v814_v48 }
 0x2d5   : > { %v728_v50 = vpop.xlane.xlu1 %727  ;;  %v999_v51 = vadd.f32 %v2287_v37, %v2285_v24 }
 0x2d6   : > { %1582 = vpow2.f32 %v889_v61  ;;  %v815_v31 = vsub.f32 %v2101_v2, %v728_v50  ;;  %v816_v40 = vsub.f32 %v2103_v3, %v728_v50 }
 0x2d7   : > { %v2293_v62 = vpop.eup %1570  ;;  %1584 = vpow2.f32 %v891_v43  ;;  %1000 = vadd.xlane.f32.xlu1 %v999_v51 }
 0x2d8   : > { %v2295_v63 = vpop.eup %1572  ;;  %v893_v52 = vmul.f32 1.442695, %v815_v31  ;;  %v895_v53 = vmul.f32 1.442695, %v816_v40 }
 0x2d9   : > { %v731_v16 = vpop.xlane.xlu1 %730  ;;  %v1002_v57 = vadd.f32 %v2295_v63, %v2293_v62 }
 0x2da   : > { %1586 = vpow2.f32 %v893_v52  ;;  %v817_v3 = vsub.f32 %v2107_v5, %v731_v16  ;;  %v818_v0 = vsub.f32 %v2109_v6, %v731_v16 }
 0x2db   : > { %v2305_v47 = vpop.eup %1574  ;;  %1588 = vpow2.f32 %v895_v53  ;;  %1003 = vadd.xlane.f32.xlu1 %v1002_v57 }
 0x2dc   : > { %v2307_v34 = vpop.eup %1576  ;;  %v897_v60 = vmul.f32 1.442695, %v817_v3  ;;  %v899_v48 = vmul.f32 1.442695, %v818_v0 }
 0x2dd   : > { %v734_v61 = vpop.xlane.xlu1 %733  ;;  %v1005_v43 = vadd.f32 %v2307_v34, %v2305_v47 }
 0x2de   : > { %1590 = vpow2.f32 %v897_v60  ;;  %v819_v50 = vsub.f32 %v2113_v8, %v734_v61  ;;  %v820_v51 = vsub.f32 %v2115_v9, %v734_v61 }
 0x2df   : > { %v2313_v5 = vpop.eup %1578  ;;  %1592 = vpow2.f32 %v899_v48  ;;  %1006 = vadd.xlane.f32.xlu1 %v1005_v43 }
 0x2e0   : > { %v2315_v6 = vpop.eup %1580  ;;  %v901_v31 = vmul.f32 1.442695, %v819_v50  ;;  %v903_v40 = vmul.f32 1.442695, %v820_v51 }
 0x2e1   : > { %v737_v53 = vpop.xlane.xlu1 %736  ;;  %v1008_v16 = vadd.f32 %v2315_v6, %v2313_v5 }
 0x2e2   : > { %1594 = vpow2.f32 %v901_v31  ;;  %v821_v9 = vsub.f32 %v2119_v11, %v737_v53  ;;  %v822_v57 = vsub.f32 %v2121_v12, %v737_v53 }
 0x2e3   : > { %v2325_v3 = vpop.eup %1582  ;;  %1596 = vpow2.f32 %v903_v40  ;;  %1009 = vadd.xlane.f32.xlu1 %v1008_v16 }
 0x2e4   : > { %v2327_v0 = vpop.eup %1584  ;;  %v905_v60 = vmul.f32 1.442695, %v821_v9  ;;  %v907_v48 = vmul.f32 1.442695, %v822_v57 }
 0x2e5   : > { %v740_v61 = vpop.xlane.xlu1 %739  ;;  %v1011_v43 = vadd.f32 %v2327_v0, %v2325_v3 }
 0x2e6   : > { %1598 = vpow2.f32 %v905_v60  ;;  %v823_v50 = vsub.f32 %v2125_v14, %v740_v61  ;;  %v824_v51 = vsub.f32 %v2127_v15, %v740_v61 }
 0x2e7   : > { %v2333_v11 = vpop.eup %1586  ;;  %1600 = vpow2.f32 %v907_v48  ;;  %1012 = vadd.xlane.f32.xlu1 %v1011_v43 }
 0x2e8   : > { %v2335_v12 = vpop.eup %1588  ;;  %v909_v31 = vmul.f32 1.442695, %v823_v50  ;;  %v911_v40 = vmul.f32 1.442695, %v824_v51 }
 0x2e9   : > { %v743_v16 = vpop.xlane.xlu1 %742  ;;  %v1014_v9 = vadd.f32 %v2335_v12, %v2333_v11 }
 0x2ea   : > { %1602 = vpow2.f32 %v909_v31  ;;  %v825_v15 = vsub.f32 %v2131_v17, %v743_v16  ;;  %v826_v57 = vsub.f32 %v2133_v18, %v743_v16 }
 0x2eb   : > { %v2345_v60 = vpop.eup %1590  ;;  %1604 = vpow2.f32 %v911_v40  ;;  %1015 = vadd.xlane.f32.xlu1 %v1014_v9 }
 0x2ec   : > { %v2347_v48 = vpop.eup %1592  ;;  %v913_v61 = vmul.f32 1.442695, %v825_v15  ;;  %v915_v43 = vmul.f32 1.442695, %v826_v57 }
 0x2ed   : > { %v1017_v50 = vadd.f32 %v2347_v48, %v2345_v60 }
 0x2ee   : > { %1606 = vpow2.f32 %v913_v61 }
 0x2ef   : > { %v2351_v51 = vpop.eup %1594  ;;  %1608 = vpow2.f32 %v915_v43  ;;  %1018 = vadd.xlane.f32.xlu1 %v1017_v50 }
 0x2f0   : > { %v2353_v31 = vpop.eup %1596 }
 0x2f1   : > { %v1020_v18 = vadd.f32 %v2353_v31, %v2351_v51 }
 0x2f3   : > { %v2361_v16 = vpop.eup %1598  ;;  %1021 = vadd.xlane.f32.xlu1 %v1020_v18 }
 0x2f4   : > { %v2363_v9 = vpop.eup %1600 }
 0x2f5   : > { %v1023_v15 = vadd.f32 %v2363_v9, %v2361_v16 }
 0x2f7   : > { %v2367_v57 = vpop.eup %1602  ;;  %1024 = vadd.xlane.f32.xlu1 %v1023_v15 }
 0x2f8   : > { %v2369_v61 = vpop.eup %1604 }
 0x2f9   : > { %v755_v50 = vpop.xlane.xlu1 %754  ;;  %v1026_v45 = vadd.f32 %v2369_v61, %v2367_v57 }
 0x2fa   : > { %v833_v59 = vsub.f32 %v2149_v26, %v755_v50  ;;  %v834_v54 = vsub.f32 %v2151_v27, %v755_v50 }
 0x2fb   : > { %v2379_v2 = vpop.eup %1606  ;;  %1027 = vadd.xlane.f32.xlu1 %v1026_v45 }
 0x2fc   : > { %v2381_v15 = vpop.eup %1608  ;;  %v929_v52 = vmul.f32 1.442695, %v833_v59  ;;  %v931_v8 = vmul.f32 1.442695, %v834_v54 }
 0x2fd   : > { %v758_v53 = vpop.xlane.xlu1 %757  ;;  %v1029_v14 = vadd.f32 %v2381_v15, %v2379_v2 }
 0x2fe   : > { %1610 = vpow2.f32 %v929_v52  ;;  %v835_v17 = vsub.f32 %v2155_v29, %v758_v53  ;;  %v836_v40 = vsub.f32 %v2157_v30, %v758_v53 }
 0x2ff   : > { %1612 = vpow2.f32 %v931_v8  ;;  %1030 = vadd.xlane.f32.xlu1 %v1029_v14 }
 0x300   : > { %v933_v26 = vmul.f32 1.442695, %v835_v17  ;;  %v935_v27 = vmul.f32 1.442695, %v836_v40 }
 0x301   : > { %v761_v50 = vpop.xlane.xlu1 %760 }
 0x302   : > { %1614 = vpow2.f32 %v933_v26  ;;  %v837_v45 = vsub.f32 %v2161_v32, %v761_v50  ;;  %v838_v59 = vsub.f32 %v2163_v33, %v761_v50 }
 0x303   : > { %1616 = vpow2.f32 %v935_v27 }
 0x304   : > { %v937_v54 = vmul.f32 1.442695, %v837_v45  ;;  %v939_v43 = vmul.f32 1.442695, %v838_v59 }
 0x305   : > { %v764_v18 = vpop.xlane.xlu1 %763 }
 0x306   : > { %1618 = vpow2.f32 %v937_v54  ;;  %v839_v52 = vsub.f32 %v2167_v35, %v764_v18  ;;  %v840_v29 = vsub.f32 %v2169_v36, %v764_v18 }
 0x307   : > { %1620 = vpow2.f32 %v939_v43 }
 0x308   : > { %v941_v30 = vmul.f32 1.442695, %v839_v52  ;;  %v943_v8 = vmul.f32 1.442695, %v840_v29 }
 0x309   : > { %v767_v53 = vpop.xlane.xlu1 %766 }
 0x30a   : > { %1622 = vpow2.f32 %v941_v30  ;;  %v841_v14 = vsub.f32 %v2173_v38, %v767_v53  ;;  %v842_v32 = vsub.f32 %v2175_v39, %v767_v53 }
 0x30b   : > { %v2393_v17 = vpop.eup %1610  ;;  %1624 = vpow2.f32 %v943_v8 }
 0x30c   : > { %2715 = vst [vmem:[#allocation21_spill] sm:$0xff] %v2393_v17  ;;  %v2395_v33 = vpop.eup %1612  ;;  %v945_v40 = vmul.f32 1.442695, %v841_v14  ;;  %v947_v26 = vmul.f32 1.442695, %v842_v32 }
 0x30d   : > { %2716 = vst [vmem:[#allocation22_spill] sm:$0xff] %v2395_v33  ;;  %v770_v27 = vpop.xlane.xlu1 %769  ;;  %v1041_v35 = vadd.f32 %v2395_v33, %v2393_v17 }
 0x30e   : > { %1626 = vpow2.f32 %v945_v40  ;;  %v843_v36 = vsub.f32 %v2179_v41, %v770_v27  ;;  %v844_v43 = vsub.f32 %v2181_v42, %v770_v27 }
 0x30f   : > { %v2401_v18 = vpop.eup %1614  ;;  %1628 = vpow2.f32 %v947_v26  ;;  %1042 = vadd.xlane.f32.xlu0 %v1041_v35 }
 0x310   : > { %2717 = vst [vmem:[#allocation23_spill] sm:$0xff] %v2401_v18  ;;  %v2403_v38 = vpop.eup %1616  ;;  %v949_v39 = vmul.f32 1.442695, %v843_v36  ;;  %v951_v50 = vmul.f32 1.442695, %v844_v43 }
 0x311   : > { %2718 = vst [vmem:[#allocation24_spill] sm:$0xff] %v2403_v38  ;;  %v773_v59 = vpop.xlane.xlu1 %772  ;;  %v1044_v54 = vadd.f32 %v2403_v38, %v2401_v18 }
 0x312   : > { %1630 = vpow2.f32 %v949_v39  ;;  %v845_v42 = vsub.f32 %v2185_v46, %v773_v59  ;;  %v846_v52 = vsub.f32 %v2187_v49, %v773_v59 }
 0x313   : > { %v2413_v29 = vpop.eup %1618  ;;  %1632 = vpow2.f32 %v951_v50  ;;  %1045 = vadd.xlane.f32.xlu0 %v1044_v54 }
 0x314   : > { %2719 = vst [vmem:[#allocation25_spill] sm:$0xff] %v2413_v29  ;;  %v2415_v30 = vpop.eup %1620  ;;  %v953_v8 = vmul.f32 1.442695, %v845_v42  ;;  %v955_v53 = vmul.f32 1.442695, %v846_v52 }
 0x315   : > { %v776_v14 = vpop.xlane.xlu1 %775  ;;  %v1047_v32 = vadd.f32 %v2415_v30, %v2413_v29 }
 0x316   : > { %1634 = vpow2.f32 %v953_v8  ;;  %v847_v40 = vsub.f32 %v2191_v55, %v776_v14  ;;  %v848_v26 = vsub.f32 %v2193_v58, %v776_v14 }
 0x317   : > { %v2421_v46 = vpop.eup %1622  ;;  %1636 = vpow2.f32 %v955_v53  ;;  %1048 = vadd.xlane.f32.xlu0 %v1047_v32 }
 0x318   : > { %v2423_v49 = vpop.eup %1624  ;;  %v957_v27 = vmul.f32 1.442695, %v847_v40  ;;  %v959_v35 = vmul.f32 1.442695, %v848_v26 }
 0x319   : > { %v779_v43 = vpop.xlane.xlu1 %778  ;;  %v1050_v39 = vadd.f32 %v2423_v49, %v2421_v46 }
 0x31a   : > { %1638 = vpow2.f32 %v957_v27  ;;  %v849_v58 = vsub.f32 %v2197_v1, %v779_v43  ;;  %v850_v50 = vsub.f32 %v2199_v4, %v779_v43 }
 0x31b   : > { %v2433_v59 = vpop.eup %1626  ;;  %1640 = vpow2.f32 %v959_v35  ;;  %1051 = vadd.xlane.f32.xlu0 %v1050_v39 }
 0x31c   : > { %v2435_v54 = vpop.eup %1628  ;;  %v961_v42 = vmul.f32 1.442695, %v849_v58  ;;  %v963_v52 = vmul.f32 1.442695, %v850_v50 }
 0x31d   : > { %v782_v8 = vpop.xlane.xlu1 %781  ;;  %v1053_v53 = vadd.f32 %v2435_v54, %v2433_v59 }
 0x31e   : > { %1642 = vpow2.f32 %v961_v42  ;;  %v851_v14 = vsub.f32 %v2203_v10, %v782_v8  ;;  %v852_v32 = vsub.f32 %v2205_v13, %v782_v8 }
 0x31f   : > { %v2441_v1 = vpop.eup %1630  ;;  %1644 = vpow2.f32 %v963_v52  ;;  %1054 = vadd.xlane.f32.xlu0 %v1053_v53 }
 0x320   : > { %v2443_v4 = vpop.eup %1632  ;;  %v965_v40 = vmul.f32 1.442695, %v851_v14  ;;  %v967_v26 = vmul.f32 1.442695, %v852_v32 }
 0x321   : > { %v746_v35 = vpop.xlane.xlu1 %745  ;;  %v785_v43 = vpop.xlane.xlu0 %784  ;;  %v1056_v39 = vadd.f32 %v2443_v4, %v2441_v1 }
 0x322   : > { %1646 = vpow2.f32 %v965_v40  ;;  %v827_v13 = vsub.f32 %v2137_v20, %v746_v35  ;;  %v828_v58 = vsub.f32 %v2139_v21, %v746_v35  ;;  %v853_v50 = vsub.f32 %v2209_v19, %v785_v43  ;;  %v2720_v21 = vld [vmem:[#allocation9_spill] sm:$0xff]  ;;  %v2721_v35 = vld [vmem:[#allocation10_spill] sm:$0xff] }
 0x323   : > { %v2454_v42 = vpop.eup %1634  ;;  %1648 = vpow2.f32 %v967_v26  ;;  %v854_v52 = vsub.f32 %v2211_v28, %v785_v43  ;;  %1057 = vadd.xlane.f32.xlu0 %v1056_v39  ;;  %v2722_v26 = vld [vmem:[#allocation13_spill] sm:$0xff]  ;;  %v2723_v43 = vld [vmem:[#allocation14_spill] sm:$0xff] }
 0x324   : > { %v2457_v8 = vpop.eup %1636  ;;  %v917_v53 = vmul.f32 1.442695, %v827_v13  ;;  %v919_v14 = vmul.f32 1.442695, %v828_v58  ;;  %v969_v32 = vmul.f32 1.442695, %v853_v50 }
 0x325   : > { %v971_v45 = vmul.f32 1.442695, %v854_v52  ;;  %v749_v41 = vpop.xlane.xlu1 %748  ;;  %v788_v40 = vpop.xlane.xlu0 %787  ;;  %v1059_v20 = vadd.f32 %v2457_v8, %v2454_v42 }
 0x326   : > { %1650 = vpow2.f32 %v917_v53  ;;  %v829_v19 = vsub.f32 %v2720_v21, %v749_v41  ;;  %v830_v36 = vsub.f32 %v2721_v35, %v749_v41  ;;  %v855_v55 = vsub.f32 %v2722_v26, %v788_v40 }
 0x327   : > { %v2464_v28 = vpop.eup %1638  ;;  %1652 = vpow2.f32 %v919_v14  ;;  %v856_v39 = vsub.f32 %v2723_v43, %v788_v40  ;;  %1060 = vadd.xlane.f32.xlu0 %v1059_v20  ;;  %v2724_v14 = vld [vmem:[#allocation11_spill] sm:$0xff]  ;;  %v2725_v20 = vld [vmem:[#allocation12_spill] sm:$0xff] }
 0x328   : > { %v2467_v13 = vpop.eup %1640  ;;  %1654 = vpow2.f32 %v969_v32  ;;  %v921_v58 = vmul.f32 1.442695, %v829_v19  ;;  %v923_v50 = vmul.f32 1.442695, %v830_v36  ;;  %v973_v52 = vmul.f32 1.442695, %v855_v55 }
 0x329   : > { %1656 = vpow2.f32 %v971_v45  ;;  %v975_v53 = vmul.f32 1.442695, %v856_v39  ;;  %v752_v27 = vpop.xlane.xlu1 %751  ;;  %v791_v21 = vpop.xlane.xlu0 %790  ;;  %v1062_v41 = vadd.f32 %v2467_v13, %v2464_v28  ;;  %v2726_v43 = vld [vmem:[#allocation15_spill] sm:$0xff]  ;;  %v2727_v45 = vld [vmem:[#allocation16_spill] sm:$0xff] }
 0x32a   : > { %1658 = vpow2.f32 %v921_v58  ;;  %v831_v40 = vsub.f32 %v2724_v14, %v752_v27  ;;  %v832_v26 = vsub.f32 %v2725_v20, %v752_v27  ;;  %v857_v32 = vsub.f32 %v2726_v43, %v791_v21 }
 0x32b   : > { %v2476_v19 = vpop.eup %1642  ;;  %1660 = vpow2.f32 %v923_v50  ;;  %v858_v36 = vsub.f32 %v2727_v45, %v791_v21  ;;  %1063 = vadd.xlane.f32.xlu0 %v1062_v41  ;;  %v2728_v50 = vld [vmem:[#allocation17_spill] sm:$0xff]  ;;  %v2729_v21 = vld [vmem:[#allocation18_spill] sm:$0xff] }
 0x32c   : > { %v2481_v39 = vpop.eup %1644  ;;  %1662 = vpow2.f32 %v973_v52  ;;  %v925_v10 = vmul.f32 1.442695, %v831_v40  ;;  %v927_v58 = vmul.f32 1.442695, %v832_v26  ;;  %v977_v35 = vmul.f32 1.442695, %v857_v32 }
 0x32d   : > { %1664 = vpow2.f32 %v975_v53  ;;  %v979_v14 = vmul.f32 1.442695, %v858_v36  ;;  %v794_v27 = vpop.xlane.xlu0 %793  ;;  %v1065_v20 = vadd.f32 %v2481_v39, %v2476_v19  ;;  %v2730_v36 = vld [vmem:[#allocation19_spill] sm:$0xff] }
 0x32e   : > { %1666 = vpow2.f32 %v925_v10  ;;  %v859_v43 = vsub.f32 %v2728_v50, %v794_v27  ;;  %v860_v41 = vsub.f32 %v2729_v21, %v794_v27  ;;  %v2731_v27 = vld [vmem:[#allocation20_spill] sm:$0xff] }
 0x32f   : > { %v2487_v45 = vpop.eup %1646  ;;  %1668 = vpow2.f32 %v927_v58  ;;  %1066 = vadd.xlane.f32.xlu0 %v1065_v20 }
 0x330   : > { %v2489_v55 = vpop.eup %1648  ;;  %1670 = vpow2.f32 %v977_v35  ;;  %v981_v52 = vmul.f32 1.442695, %v859_v43  ;;  %v983_v40 = vmul.f32 1.442695, %v860_v41 }
 0x331   : > { %1672 = vpow2.f32 %v979_v14  ;;  %v797_v26 = vpop.xlane.xlu0 %796  ;;  %v1068_v10 = vadd.f32 %v2489_v55, %v2487_v45 }
 0x332   : > { %1674 = vpow2.f32 %v981_v52  ;;  %v861_v58 = vsub.f32 %v2730_v36, %v797_v26  ;;  %v862_v20 = vsub.f32 %v2731_v27, %v797_v26 }
 0x333   : > { %v1651_v50 = vpop.eup %1650  ;;  %1676 = vpow2.f32 %v983_v40  ;;  %1069 = vadd.xlane.f32.xlu0 %v1068_v10 }
 0x334   : > { %v1653_v35 = vpop.eup %1652  ;;  %v985_v43 = vmul.f32 1.442695, %v861_v58  ;;  %v987_v21 = vmul.f32 1.442695, %v862_v20 }
 0x335   : > { %v2499_v41 = vpop.eup %1654  ;;  %v800_v14 = vpop.xlane.xlu0 %799  ;;  %v1032_v53 = vadd.f32 %v1653_v35, %v1651_v50 }
 0x336   : > { %v2501_v17 = vpop.eup %1656  ;;  %1678 = vpow2.f32 %v985_v43  ;;  %v863_v32 = vsub.f32 %v2245_v25, %v800_v14  ;;  %v864_v52 = vsub.f32 %v2247_v7, %v800_v14 }
 0x337   : > { %v1659_v36 = vpop.eup %1658  ;;  %1680 = vpow2.f32 %v987_v21  ;;  %1033 = vadd.xlane.f32.xlu1 %v1032_v53  ;;  %v1071_v40 = vadd.f32 %v2501_v17, %v2499_v41 }
 0x338   : > { %v1661_v26 = vpop.eup %1660  ;;  %v989_v10 = vmul.f32 1.442695, %v863_v32  ;;  %v991_v58 = vmul.f32 1.442695, %v864_v52 }
 0x339   : > { %v2507_v27 = vpop.eup %1662  ;;  %1072 = vadd.xlane.f32.xlu0 %v1071_v40  ;;  %v1035_v20 = vadd.f32 %v1661_v26, %v1659_v36  ;;  %v1210_v40 = vpack.c.bf16 %v1653_v35, %v2381_v15  ;;  %v2733_v15 = vpack.c.bf16 %v2367_v57, %v2361_v16  ;;  %v2734_v35 = vpack.c.bf16 %v2353_v31, %v2347_v48 }
 0x33a   : > { %v1665_v18 = vpop.eup %1664  ;;  %1682 = vpow2.f32 %v989_v10  ;;  %v2738_v16 = vpack.c.bf16 %v2315_v6, %v2307_v34  ;;  %v2739_v48 = vpack.c.bf16 %v2313_v5, %v2305_v47  ;;  %v2743_v34 = vpack.c.bf16 %v2273_v44, %v2265_v22 }
 0x33b   : > { %v1667_v43 = vpop.eup %1666  ;;  %1684 = vpow2.f32 %v991_v58  ;;  %1036 = vadd.xlane.f32.xlu1 %v1035_v20  ;;  %v1074_v25 = vadd.f32 %v1665_v18, %v2507_v27  ;;  %v1209_v58 = vpack.c.bf16 %v1651_v50, %v2379_v2  ;;  %v2735_v50 = vpack.c.bf16 %v2351_v51, %v2345_v60 }
 0x33c   : > { %v1669_v7 = vpop.eup %1668  ;;  %v1211_v21 = vpack.c.bf16 %v1667_v43, %v1659_v36  ;;  %v2740_v60 = vpack.c.bf16 %v2295_v63, %v2287_v37  ;;  %v2744_v44 = vpack.c.bf16 %v2489_v55, %v2481_v39  ;;  %v2745_v51 = vpack.c.bf16 %v2487_v45, %v2476_v19  ;;  %v2753_v55 = vld [vmem:[#allocation24_spill] sm:$0xff]  ;;  %v2754_v39 = vld [vmem:[#allocation22_spill] sm:$0xff] }
 0x33d   : > { %v1671_v53 = vpop.eup %1670  ;;  %1075 = vadd.xlane.f32.xlu0 %v1074_v25  ;;  %v1212_v14 = vpack.c.bf16 %v1669_v7, %v1661_v26  ;;  %v1038_v33 = vadd.f32 %v1669_v7, %v1667_v43  ;;  %v2732_v26 = vpack.c.bf16 %v2369_v61, %v2363_v9  ;;  %v2736_v9 = vpack.c.bf16 %v2335_v12, %v2327_v0 }
 0x33e   : > { %v1673_v38 = vpop.eup %1672  ;;  %v2737_v61 = vpack.c.bf16 %v2333_v11, %v2325_v3  ;;  %v2741_v0 = vpack.c.bf16 %v2293_v62, %v2285_v24  ;;  %v2742_v3 = vpack.c.bf16 %v2275_v56, %v2267_v23  ;;  %v1224_v24 = vpack.c.bf16 %v1665_v18, %v2501_v17 }
 0x33f   : > { %v1675_v32 = vpop.eup %1674  ;;  %1229 = vmatprep.subr.bf16.mxu0 %v1212_v14  ;;  %1039 = vadd.xlane.f32.xlu1 %v1038_v33  ;;  %v1077_v52 = vadd.f32 %v1673_v38, %v1671_v53  ;;  %v1223_v23 = vpack.c.bf16 %v2507_v27, %v2499_v41  ;;  %v2746_v31 = vpack.c.bf16 %v2467_v13, %v2457_v8 }
 0x340   : > { %v1677_v29 = vpop.eup %1676  ;;  %1230 = vmatpush1.bf16.msra.mxu0 %v1211_v21  ;;  %v1225_v63 = vpack.c.bf16 %v1675_v32, %v1671_v53  ;;  %v2747_v17 = vpack.c.bf16 %v2464_v28, %v2454_v42  ;;  %v2749_v19 = vpack.c.bf16 %v2441_v1, %v2433_v59  ;;  %v2750_v13 = vpack.c.bf16 %v2423_v49, %v2415_v30  ;;  %v2751_v42 = vld [vmem:[#allocation25_spill] sm:$0xff]  ;;  %v2756_v59 = vld [vmem:[#allocation23_spill] sm:$0xff] }
 0x341   : > { %1078 = vadd.xlane.f32.xlu0 %v1077_v52  ;;  %1231 = vmatprep.subr.bf16.mxu0 %v1210_v40  ;;  %v1080_v10 = vadd.f32 %v1677_v29, %v1675_v32  ;;  %v1226_v6 = vpack.c.bf16 %v1677_v29, %v1673_v38  ;;  %v2748_v38 = vpack.c.bf16 %v2443_v4, %v2435_v54  ;;  %v2757_v1 = vld [vmem:[#allocation21_spill] sm:$0xff] }
 0x342   : > { %v2752_v28 = vpack.c.bf16 %v2421_v46, %v2751_v42  ;;  %v2755_v45 = vpack.c.bf16 %v2753_v55, %v2754_v39  ;;  %v2758_v41 = vpack.c.bf16 %v2756_v59, %v2757_v1 }
 0x343   : > { %v1679_v20 = vpop.eup %1678 }
 0x344   : > { %v1681_v36 = vpop.eup %1680  ;;  %1232 = vmatpush1.bf16.msra.mxu0 %v1209_v58 }
 0x345   : > { %1081 = vadd.xlane.f32.xlu0 %v1080_v10  ;;  %1233 = vmatprep.subr.bf16.mxu0 %v2732_v26  ;;  %v1083_v43 = vadd.f32 %v1681_v36, %v1679_v20 }
 0x347   : > { %v1683_v33 = vpop.eup %1682 }
 0x348   : > { %v1685_v25 = vpop.eup %1684  ;;  %1234 = vmatpush1.bf16.msra.mxu0 %v2733_v15  ;;  %v1227_v5 = vpack.c.bf16 %v1683_v33, %v1679_v20 }
 0x349   : > { %1084 = vadd.xlane.f32.xlu0 %v1083_v43  ;;  %1235 = vmatprep.subr.bf16.mxu0 %v2734_v35  ;;  %v1086_v2 = vadd.f32 %v1685_v25, %v1683_v33  ;;  %v1228_v11 = vpack.c.bf16 %v1685_v25, %v1681_v36 }
 0x34c   : > { %1236 = vmatpush1.bf16.msra.mxu0 %v2735_v50 }
 0x34d   : > { %1087 = vadd.xlane.f32.xlu0 %v1086_v2  ;;  %1237 = vmatprep.subr.bf16.mxu0 %v2736_v9 }
 0x350   : > { %1238 = vmatpush1.bf16.msra.mxu0 %v2737_v61 }
 0x351   : > { %1239 = vmatprep.subr.bf16.mxu0 %v2738_v16 }
 0x354   : > { %1240 = vmatpush1.bf16.msra.mxu0 %v2739_v48 }
 0x355   : > { %1241 = vmatprep.subr.bf16.mxu0 %v2740_v60 }
 0x358   : > { %1242 = vmatpush1.bf16.msra.mxu0 %v2741_v0  ;;  %v995_v12 = vpop.xlane.xlu1 %994 }
 0x359   : > { %1243 = vmatprep.subr.bf16.mxu0 %v2742_v3  ;;  %1686 = vrcp.f32 %v995_v12 }
 0x35c   : > { %1244 = vmatpush1.bf16.msra.mxu0 %v2743_v34  ;;  %v998_v47 = vpop.xlane.xlu1 %997 }
 0x35d   : > { %1245 = vmatprep.subr.bf16.mxu0 %v1228_v11  ;;  %1688 = vrcp.f32 %v998_v47 }
 0x360   : > { %v1001_v37 = vpop.xlane.xlu1 %1000  ;;  %1246 = vmatpush2.bf16.msra.mxu0 %v1227_v5 }
 0x361   : > { %1247 = vmatprep.subr.bf16.mxu0 %v1226_v6  ;;  %1690 = vrcp.f32 %v1001_v37 }
 0x364   : > { %v1004_v62 = vpop.xlane.xlu1 %1003  ;;  %1248 = vmatpush2.bf16.msra.mxu0 %v1225_v63 }
 0x365   : > { %1249 = vmatprep.subr.bf16.mxu0 %v1224_v24  ;;  %1692 = vrcp.f32 %v1004_v62 }
 0x366   : > { %v1687_v18 = vpop.eup %1686 }
 0x368   : > { %v1007_v22 = vpop.xlane.xlu1 %1006  ;;  %1250 = vmatpush2.bf16.msra.mxu0 %v1223_v23 }
 0x369   : > { %1251 = vmatprep.subr.bf16.mxu0 %v2744_v44  ;;  %1694 = vrcp.f32 %v1007_v22 }
 0x36a   : > { %v1689_v8 = vpop.eup %1688 }
 0x36c   : > { %v1010_v56 = vpop.xlane.xlu1 %1009  ;;  %1252 = vmatpush2.bf16.msra.mxu0 %v2745_v51 }
 0x36d   : > { %1253 = vmatprep.subr.bf16.mxu0 %v2746_v31  ;;  %1696 = vrcp.f32 %v1010_v56  ;;  %v2581_v46 = vpop.f32.mrf.mxu0 }
 0x36e   : > { %v1691_v54 = vpop.eup %1690 }
 0x36f   : > { %v2583_v7 = vpop.f32.mrf.mxu0 }
 0x370   : > { %v1013_v57 = vpop.xlane.xlu1 %1012  ;;  %1254 = vmatpush2.bf16.msra.mxu0 %v2747_v17 }
 0x371   : > { %1255 = vmatprep.subr.bf16.mxu0 %v2748_v38  ;;  %1698 = vrcp.f32 %v1013_v57  ;;  %v421_v14 = vpop.f32.mrf.mxu0 }
 0x372   : > { %1121 = vxpose.xlu1.b32.start [1/16] (narrow) %v1687_v18, 8  ;;  %v1693_v30 = vpop.eup %1692 }
 0x373   : > { %v422_v32 = vpop.f32.mrf.mxu0 }
 0x374   : > { %v1016_v29 = vpop.xlane.xlu1 %1015  ;;  %1256 = vmatpush2.bf16.msra.mxu0 %v2749_v19 }
 0x375   : > { %1257 = vmatprep.subr.bf16.mxu0 %v2750_v13  ;;  %1700 = vrcp.f32 %v1016_v29 }
 0x376   : > { %1122 = vxpose.xlu1.b32.cont [2/16] (narrow) %v1689_v8, 8  ;;  %v1695_v27 = vpop.eup %1694 }
 0x378   : > { %1258 = vmatpush2.bf16.msra.mxu0 %v2752_v28  ;;  %v1019_v4 = vpop.xlane.xlu1 %1018 }
 0x379   : > { %1259 = vmatprep.subr.bf16.mxu0 %v2755_v45  ;;  %1702 = vrcp.f32 %v1019_v4 }
 0x37a   : > { %1123 = vxpose.xlu1.b32.cont [3/16] (narrow) %v1691_v54, 8  ;;  %v1697_v21 = vpop.eup %1696  ;;  %v1185_v54 = vlaneseq }
 0x37c   : > { %1260 = vmatpush2.bf16.msra.mxu0 %v2758_v41  ;;  %v1022_v49 = vpop.xlane.xlu1 %1021  ;;  %v1186_v4 = vshrl.u32 %v1185_v54, 7 }
 0x37d   : > { %1704 = vrcp.f32 %v1022_v49 }
 0x37e   : > { %1124 = vxpose.xlu1.b32.cont [4/16] (narrow) %v1693_v30, 8  ;;  %v1699_v52 = vpop.eup %1698  ;;  %v1187_v55 = vsub.s32 0, %v1186_v4 }
 0x380   : > { %v1025_v53 = vpop.xlane.xlu1 %1024 }
 0x381   : > { %1706 = vrcp.f32 %v1025_v53 }
 0x382   : > { %1125 = vxpose.xlu1.b32.cont [5/16] (narrow) %v1695_v27, 8  ;;  %v1701_v10 = vpop.eup %1700 }
 0x384   : > { %v1028_v40 = vpop.xlane.xlu1 %1027 }
 0x385   : > { %1708 = vrcp.f32 %v1028_v40 }
 0x386   : > { %1126 = vxpose.xlu1.b32.cont [6/16] (narrow) %v1697_v21, 8  ;;  %v1703_v58 = vpop.eup %1702  ;;  %v2759_v21 = vmov 0  }
 0x388   : > { %v1031_v20 = vpop.xlane.xlu1 %1030 }
 0x389   : > { %1710 = vrcp.f32 %v1031_v20  ;;  %v1352_v20 = vstv %s1351_s18 }
 0x38a   : > { %1127 = vxpose.xlu1.b32.cont [7/16] (narrow) %v1699_v52, 8  ;;  %v1705_v36 = vpop.eup %1704 }
 0x38e   : > { %1128 = vxpose.xlu1.b32.cont [8/16] (narrow) %v1701_v10, 8  ;;  %v1707_v43 = vpop.eup %1706 }
 0x392   : > { %1129 = vxpose.xlu1.b32.cont [9/16] (narrow) %v1703_v58, 8  ;;  %v1709_v25 = vpop.eup %1708  ;;  %v1557_v58 = vld [vmem:[%s2673_s4 + $0x8] sm:$0xff]  }
 0x396   : > { %1130 = vxpose.xlu1.b32.cont [10/16] (narrow) %v1705_v36, 8  ;;  %v1711_v35 = vpop.eup %1710 }
 0x398   : > { %v1043_v26 = vpop.xlane.xlu0 %1042 }
 0x399   : > { %1712 = vrcp.f32 %v1043_v26 }
 0x39a   : > { %1131 = vxpose.xlu1.b32.cont [11/16] (narrow) %v1707_v43, 8 }
 0x39c   : > { %v1046_v33 = vpop.xlane.xlu0 %1045 }
 0x39d   : > { %1714 = vrcp.f32 %v1046_v33  ;;  %v1750_v33 = vld [vmem:[%s2000_s8] sm:$0xff] }
 0x39e   : > { %1132 = vxpose.xlu1.b32.cont [12/16] (narrow) %v1709_v25, 8 }
 0x3a0   : > { %v1049_v15 = vpop.xlane.xlu0 %1048 }
 0x3a1   : > { %1716 = vrcp.f32 %v1049_v15 }
 0x3a2   : > { %1133 = vxpose.xlu1.b32.cont [13/16] (narrow) %v1711_v35, 8 }
 0x3a4   : > { %v1052_v2 = vpop.xlane.xlu0 %1051 }
 0x3a5   : > { %1718 = vrcp.f32 %v1052_v2  ;;  %v1751_v2 = vld [vmem:[%s2000_s8 + $0x8] sm:$0xff] }
 0x3a6   : > { %v1713_v50 = vpop.eup %1712 }
 0x3a7   : > { %1153 = vxpose.xlu0.b32.start [1/16] (narrow) %v1713_v50, 8 }
 0x3a8   : > { %v1055_v9 = vpop.xlane.xlu0 %1054 }
 0x3a9   : > { %1720 = vrcp.f32 %v1055_v9 }
 0x3aa   : > { %v1715_v61 = vpop.eup %1714 }
 0x3ab   : > { %1154 = vxpose.xlu0.b32.cont [2/16] (narrow) %v1715_v61, 8 }
 0x3ac   : > { %v1058_v16 = vpop.xlane.xlu0 %1057 }
 0x3ad   : > { %1722 = vrcp.f32 %v1058_v16  ;;  %v1752_v16 = vld [vmem:[%s2000_s8 + $0x10] sm:$0xff] }
 0x3ae   : > { %v1717_v48 = vpop.eup %1716 }
 0x3af   : > { %1155 = vxpose.xlu0.b32.cont [3/16] (narrow) %v1717_v48, 8 }
 0x3b0   : > { %v1061_v60 = vpop.xlane.xlu0 %1060 }
 0x3b1   : > { %1724 = vrcp.f32 %v1061_v60 }
 0x3b2   : > { %v1719_v0 = vpop.eup %1718 }
 0x3b3   : > { %1156 = vxpose.xlu0.b32.cont [4/16] (narrow) %v1719_v0, 8 }
 0x3b4   : > { %v1064_v12 = vpop.xlane.xlu0 %1063 }
 0x3b5   : > { %1726 = vrcp.f32 %v1064_v12  ;;  %v1753_v12 = vld [vmem:[%s2000_s8 + $0x18] sm:$0xff] }
 0x3b6   : > { %v1721_v3 = vpop.eup %1720 }
 0x3b7   : > { %1157 = vxpose.xlu0.b32.cont [5/16] (narrow) %v1721_v3, 8 }
 0x3b8   : > { %v1067_v11 = vpop.xlane.xlu0 %1066 }
 0x3b9   : > { %1728 = vrcp.f32 %v1067_v11 }
 0x3ba   : > { %v1723_v34 = vpop.eup %1722 }
 0x3bb   : > { %1158 = vxpose.xlu0.b32.cont [6/16] (narrow) %v1723_v34, 8 }
 0x3bc   : > { %v1070_v47 = vpop.xlane.xlu0 %1069 }
 0x3bd   : > { %1730 = vrcp.f32 %v1070_v47  ;;  %v1754_v47 = vld [vmem:[%s2000_s8 + $0x20] sm:$0xff] }
 0x3be   : > { %v1725_v5 = vpop.eup %1724 }
 0x3bf   : > { %1159 = vxpose.xlu0.b32.cont [7/16] (narrow) %v1725_v5, 8 }
 0x3c0   : > { %v1034_v6 = vpop.xlane.xlu1 %1033 }
 0x3c1   : > { %1732 = vrcp.f32 %v1034_v6 }
 0x3c2   : > { %v1727_v37 = vpop.eup %1726  ;;  %v1073_v63 = vpop.xlane.xlu0 %1072 }
 0x3c3   : > { %1734 = vrcp.f32 %v1073_v63  ;;  %1160 = vxpose.xlu0.b32.cont [8/16] (narrow) %v1727_v37, 8  ;;  %v1755_v63 = vld [vmem:[%s2000_s8 + $0x28] sm:$0xff] }
 0x3c4   : > { %v1037_v24 = vpop.xlane.xlu1 %1036 }
 0x3c5   : > { %1736 = vrcp.f32 %v1037_v24 }
 0x3c6   : > { %v1729_v62 = vpop.eup %1728  ;;  %v1076_v23 = vpop.xlane.xlu0 %1075 }
 0x3c7   : > { %1738 = vrcp.f32 %v1076_v23  ;;  %1161 = vxpose.xlu0.b32.cont [9/16] (narrow) %v1729_v62, 8 }
 0x3c8   : > { %v1040_v22 = vpop.xlane.xlu1 %1039 }
 0x3c9   : > { %1740 = vrcp.f32 %v1040_v22  ;;  %v1756_v22 = vld [vmem:[%s2000_s8 + $0x30] sm:$0xff] }
 0x3ca   : > { %v1731_v44 = vpop.eup %1730  ;;  %v1079_v56 = vpop.xlane.xlu0 %1078 }
 0x3cb   : > { %1742 = vrcp.f32 %v1079_v56  ;;  %1162 = vxpose.xlu0.b32.cont [10/16] (narrow) %v1731_v44, 8 }
 0x3ce   : > { %v1733_v51 = vpop.eup %1732  ;;  %v1082_v31 = vpop.xlane.xlu0 %1081 }
 0x3cf   : > { %1744 = vrcp.f32 %v1082_v31  ;;  %1134 = vxpose.xlu1.b32.cont [14/16] (narrow) %v1733_v51, 8  ;;  %v1757_v51 = vld [vmem:[%s2000_s8 + $0x38] sm:$0xff] }
 0x3d0   : > { %v1735_v57 = vpop.eup %1734 }
 0x3d1   : > { %1163 = vxpose.xlu0.b32.cont [11/16] (narrow) %v1735_v57, 8 }
 0x3d2   : > { %v1737_v17 = vpop.eup %1736  ;;  %v1085_v18 = vpop.xlane.xlu0 %1084 }
 0x3d3   : > { %1746 = vrcp.f32 %v1085_v18  ;;  %1135 = vxpose.xlu1.b32.cont [15/16] (narrow) %v1737_v17, 8 }
 0x3d4   : > { %v1739_v38 = vpop.eup %1738 }
 0x3d5   : > { %1164 = vxpose.xlu0.b32.cont [12/16] (narrow) %v1739_v38, 8 }
 0x3d6   : > { %v1741_v29 = vpop.eup %1740  ;;  %v1088_v19 = vpop.xlane.xlu0 %1087 }
 0x3d7   : > { %1748 = vrcp.f32 %v1088_v19  ;;  %1136 = vxpose.xlu1.b32.end [16/16] (narrow) %v1741_v29, 8 }
 0x3d8   : > { %v1743_v8 = vpop.eup %1742 }
 0x3d9   : > { %1165 = vxpose.xlu0.b32.cont [13/16] (narrow) %v1743_v8, 8 }
 0x3dc   : > { %v1745_v13 = vpop.eup %1744 }
 0x3dd   : > { %1166 = vxpose.xlu0.b32.cont [14/16] (narrow) %v1745_v13, 8 }
 0x3e0   : > { %v1747_v42 = vpop.eup %1746 }
 0x3e1   : > { %1167 = vxpose.xlu0.b32.cont [15/16] (narrow) %v1747_v42, 8 }
 0x3e4   : > { %v1749_v28 = vpop.eup %1748 }
 0x3e5   : > { %1168 = vxpose.xlu0.b32.end [16/16] (narrow) %v1749_v28, 8 }
 0x417   : > { %v1137_v39 = vpop.trf.xlu1 }
 0x418   : > { %v1188_v45 = vrot.slane %v1137_v39, %v1187_v55 }
 0x41a   : > { %v1193_v41 = vmul.f32 %v1188_v45, %v2581_v46  ;;  %v1556_v46 = vld [vmem:[%s2673_s4] sm:$0xff]  }
 0x41c   : > { %v1195_v27 = vpack.c.bf16 %v1193_v41, %v1193_v41 }
 0x425   : > { %v1169_v59 = vpop.trf.xlu0 }
 0x426   : > { %v1192_v1 = vrot.slane %v1169_v59, %v1187_v55 }
 0x428   : > { %v1194_v30 = vmul.f32 %v1192_v1, %v2583_v7 }
 0x42a   : > { %v1196_v49 = vpack.c.bf16 %v1194_v30, %v1194_v30 }
 0x42c   : > { %1261 = vmatprep.mubr.bf16.mxu0 %v1196_v49 }
 0x42d   : > { %1262 = vmatmul.mubr.bf16.vlgmr.msra.gmra.mxu0 %v1195_v27 }
 0x42e   : > { %1330 = vmatprep.mubr.bf16.mxu0 %v2759_v21 }
 0x4ed   : > { %v1263_v53 = vpop.f32.mrf.mxu0 }
 0x4ee   : > { %v1274_v14 = vpack.c.bf16 %v1263_v53, %v1263_v53 }
 0x4ef   : > { %v1265_v32 = vpop.f32.mrf.mxu0 }
 0x4f0   : > { %v1275_v52 = vpack.c.bf16 %v1265_v32, %v1265_v32  ;;  %v1293_v10 = vsel %vm505_vm1, %v1274_v14, 0 }
 0x4f1   : > { %v1267_v40 = vpop.f32.mrf.mxu0 }
 0x4f2   : > { %1495 = vmatprep.subr.msk.bf16.mxu0 %vm505_vm1, %v1275_v52 }
 0x4f3   : > { %v1268_v7 = vpop.f32.mrf.mxu0  ;;  %1313 = vmatpush1.bf16.msra.mxu0 %v1293_v10 }
 0x4f6   : > { %1496 = vmatmul.mubr.msk.bf16.vlgmr.msra.gmra.mxu0 %vm456_vm2, %v1556_v46 }
 0x4f7   : > { %1340 = vmatprep.mubr.bf16.mxu0 %v2759_v21 }
 0x4fe   : > { %1497 = vmatmul.mubr.msk.bf16.gmra.mxu0 %vm456_vm2, %v1557_v58 }
 0x5b6   : > { %v1332_v36 = vpop.f32.mrf.mxu0 }
 0x5b7   : > { %v1353_v26 = vmul.f32 %v1352_v20, %v1332_v36 }
 0x5b8   : > { %v1334_v43 = vpop.f32.mrf.mxu0 }
 0x5b9   : > { %v1361_v25 = vadd.f32 %v1750_v33, %v1353_v26  ;;  %v1354_v15 = vmul.f32 %v1352_v20, %v1334_v43 }
 0x5ba   : > { %v1336_v35 = vpop.f32.mrf.mxu0 }
 0x5bb   : > { %1369 = vst [vmem:[%s2602_s22] sm:$0xff] %v1361_v25  ;;  %v1362_v50 = vadd.f32 %v1751_v2, %v1354_v15  ;;  %v1355_v9 = vmul.f32 %v1352_v20, %v1336_v35 }
 0x5bc   : > { %v1338_v61 = vpop.f32.mrf.mxu0 }
 0x5bd   : > { %1370 = vst [vmem:[%s2602_s22 + $0x8] sm:$0xff] %v1362_v50  ;;  %v1363_v48 = vadd.f32 %v1752_v16, %v1355_v9  ;;  %v1356_v60 = vmul.f32 %v1352_v20, %v1338_v61 }
 0x5be   : > { %v1342_v0 = vpop.f32.mrf.mxu0 }
 0x5bf   : > { %1371 = vst [vmem:[%s2602_s22 + $0x10] sm:$0xff] %v1363_v48  ;;  %v1364_v3 = vadd.f32 %v1753_v12, %v1356_v60  ;;  %v1357_v11 = vmul.f32 %v1352_v20, %v1342_v0 }
 0x5c0   : > { %v1344_v34 = vpop.f32.mrf.mxu0 }
 0x5c1   : > { %1372 = vst [vmem:[%s2602_s22 + $0x18] sm:$0xff] %v1364_v3  ;;  %v1365_v5 = vadd.f32 %v1754_v47, %v1357_v11  ;;  %v1358_v6 = vmul.f32 %v1352_v20, %v1344_v34 }
 0x5c2   : > { %v1346_v37 = vpop.f32.mrf.mxu0 }
 0x5c3   : > { %1373 = vst [vmem:[%s2602_s22 + $0x20] sm:$0xff] %v1365_v5  ;;  %v1366_v24 = vadd.f32 %v1755_v63, %v1358_v6  ;;  %v1359_v62 = vmul.f32 %v1352_v20, %v1346_v37 }
 0x5c4   : > { %v1348_v23 = vpop.f32.mrf.mxu0 }
 0x5c5   : > { %1374 = vst [vmem:[%s2602_s22 + $0x28] sm:$0xff] %v1366_v24  ;;  %v1367_v44 = vadd.f32 %v1756_v22, %v1359_v62  ;;  %v1360_v56 = vmul.f32 %v1352_v20, %v1348_v23 }
 0x5c7   : > { %1375 = vst [vmem:[%s2602_s22 + $0x30] sm:$0xff] %v1367_v44  ;;  %v1368_v31 = vadd.f32 %v1757_v51, %v1360_v56 }
 0x5c9   : > { %1376 = vst [vmem:[%s2602_s22 + $0x38] sm:$0xff] %v1368_v31 }
 0x5ca   : > { %1799 = shalt.err (!%p1796_p10)
}
 0x5cb   : > { %s1800_s8 = scalar_lea.hbm %s2623_s19, 1024  ;;  %s1804_s16 = scalar_lea.hbm %s2675_s6, 2048 }
 0x5cc   : > { %p1801_p0 = scmp.ne.s32.totalorder %s2623_s19, %s1800_s8  ;;  %p1805_p1 = scmp.lt.s32.totalorder %s2623_s19, %s2675_s6 }
 0x5cd   : > { %p1806_p3 = scmp.lt.s32.totalorder %s1804_s16, %s1800_s8 }
 0x5ce   : > { %p1802_p2 = pnand %p1801_p0, %p2760_p12 }
 0x5cf   : > { %p1807_p6 = por %p1806_p3, %p1805_p1 }
 0x5d0   : > { %p1803_p9 = pneg %p1802_p2 }
 0x5d2   : > { %p1808_p11 = pnand %p1807_p6, %p1803_p9 }
 0x5d4   : > { %1811 = shalt.err (!%p1808_p11)
}
 0x5d5   : > { %s1857_s30 = smov 256   ;;  %s1858_s9 = smov 16  }
 0x5d6   : > { %1507 = dma.vmem_to_hbm [thread:$0]  (%p2760_p12), %s2616_s29, 1024, %s2623_s19, %s1378_s5, %s1857_s30, %s1857_s30, %s1858_s9  }
 0x5d7 PF: > { %s1406_s17 = sand.u32 1, %s1838_s23   ;;  %p2761_p13 = scmp.ne.s32.totalorder %s2700_s11, 0 }
 0x5d8   : > { %p2762_p4 = scmp.ge.s32.totalorder %s1850_s26, 2  ;;  %s1407_s20 = scalar_lea.sflag [#allocation5], %s1406_s17 }
 0x5da   : > { %p1514_p5 = pnand %p2762_p4, %p2761_p13 }
 0x5dc   : > { %p1515_p7 = pneg %p1514_p5 }
 0x5de   : > { %1833 = dma.done.wait (%p1515_p7), %s1407_s20, 1024  }
 0x5df   : > { %1835 = vsyncadd (%p1515_p7), %s1407_s20, 4294966272  ;;  %p20_p8 = scmp.ge.s32.totalorder %s1922_s28, 4   ;;  %s2763_s23 = smov %s1842_s24 }
 0x5e0   : > { %s2764_s24 = smov %s1846_s25  ;;  %s2765_s25 = smov %s1934_s7 }
 0x5e1   : > { %s2766_s26 = smov %s1922_s28  ;;  %22 = sbr.rel (!%p20_p8) target bundleno = 7 (0x7), region = 89 }
 0x5e6   :  { %1412 = vsyncpa [#allocation4], 1 }
 0x5e7   :  { %1414 = vsyncpa [#allocation4 + $0x1], 1 }
 0x5e8   :  { %1415 = vsyncpa [#allocation5], 1 }
 0x5e9   :  { %1417 = vsyncpa [#allocation5 + $0x1], 1 }

</bundles_post_ra>
